<compile_context>
chip_gen: v5e
topology: v5e:2x2
jax: 0.10.0
libtpu: 0.0.40
codegen_flags: <defaults>
</compile_context>

<pallas_src>
import functools

import jax
import jax.numpy as jnp
from jax.experimental import pallas as pl
from jax.experimental.pallas import tpu as pltpu


def _round_up(x, m):
    return (x + m - 1) // m * m


def _conv_stats_kernel(x_ref, w_ref, z_ref, stats_ref, xp_ref, *,
                       cin, cout, h, w, wp, lanes, ho, wo, stride):
    """One image: pad in VMEM, 3x3 conv as 9 accumulating MXU matmuls on
    lane-shifted views, compact lane-dense output + per-channel stats."""
    # --- build the zero-padded, flattened image in VMEM (no wrapper jnp.pad) ---
    xp_ref[...] = jnp.zeros_like(xp_ref)
    for i in range(h):
        xp_ref[:, pl.ds((i + 1) * wp + 1, w)] = x_ref[0, :, pl.ds(i * w, w)]

    # --- conv: 9 accumulating matmuls, bf16 MXU operands, f32 accumulation ---
    acc = jnp.zeros((cout, lanes), jnp.float32)
    for kh in range(3):
        for kw in range(3):
            d = kh * wp + kw
            acc = acc + jnp.dot(
                w_ref[kh * 3 + kw],                                 # (cout, cin) bf16
                xp_ref[:, pl.ds(d, lanes)].astype(jnp.bfloat16),    # (cin, lanes) bf16
                preferred_element_type=jnp.float32)

    # --- extract valid rows -> compact (cout, ho*wo) output + channel stats ---
    # TODO(synk): for very large H the unrolled row loops should become a
    # fori_loop / extra grid axis to bound trace size and live ranges.
    s0 = jnp.zeros((cout, 1), jnp.float32)
    s1 = jnp.zeros((cout, 1), jnp.float32)
    for i in range(ho):
        if stride == 1:
            row = acc[:, i * wp:i * wp + wo]
        else:
            # TODO(synk): strided-lane extraction (stride > 1) not exercised by
            # the test harness; verify on HW before relying on it.
            base = i * stride * wp
            row = acc[:, base:base + (wo - 1) * stride + 1:stride]
        z_ref[0, :, pl.ds(i * wo, wo)] = row
        s0 = s0 + jnp.sum(row, axis=1, keepdims=True)
        s1 = s1 + jnp.sum(row * row, axis=1, keepdims=True)
    stats_ref[0, :, :] = jnp.concatenate([s0, s1], axis=1)   # single write per step


def _bn_lrelu_kernel(z_ref, scale_ref, shift_ref, out_ref, *, slope):
    """Fused BN affine (precomputed per-channel scale/shift) + LeakyReLU."""
    y = z_ref[...] * scale_ref[...] + shift_ref[...]
    out_ref[...] = jnp.where(y > 0, y, slope * y)


def conv_bn_forward(x_nchw, w_oihw, gamma, beta, *, stride=1, eps=1e-5, slope=0.01):
    n, cin, h, w = x_nchw.shape
    cout = w_oihw.shape[0]
    hp, wp = h + 2, w + 2
    ho = (h - 1) // stride + 1          # (H + 2*1 - 3)//s + 1
    wo = (w - 1) // stride + 1
    hwo = ho * wo

    # Lane-dense geometry (multiples of 128).
    p_max = (ho - 1) * stride * wp + (wo - 1) * stride   # last padded-flat lane used
    lanes = _round_up(p_max + 1, 128)                    # MXU / accumulator lane width
    d_max = 2 * wp + 2                                   # largest tap lane offset
    xp_lanes = _round_up(max(lanes + d_max, hp * wp), 128)

    # ---- inputs: x stays unpadded NCHW-flat (f32); weights go tap-major bf16 ----
    x_flat = x_nchw.astype(jnp.float32).reshape(n, cin, h * w)
    # w[o, c, kh, kw] -> w_taps[kh*3+kw, o, c]
    w_taps = (jnp.transpose(w_oihw.astype(jnp.float32), (2, 3, 0, 1))
              .reshape(9, cout, cin).astype(jnp.bfloat16))

    conv_kernel = functools.partial(
        _conv_stats_kernel, cin=cin, cout=cout, h=h, w=w, wp=wp,
        lanes=lanes, ho=ho, wo=wo, stride=stride)

    z, stats = pl.pallas_call(
        conv_kernel,
        out_shape=(jax.ShapeDtypeStruct((n, cout, hwo), jnp.float32),
                   jax.ShapeDtypeStruct((n, cout, 2), jnp.float32)),
        grid=(n,),
        in_specs=[
            pl.BlockSpec((1, cin, h * w), lambda i: (i, 0, 0)),
            pl.BlockSpec((9, cout, cin), lambda i: (0, 0, 0)),
        ],
        out_specs=(
            pl.BlockSpec((1, cout, hwo), lambda i: (i, 0, 0)),
            pl.BlockSpec((1, cout, 2), lambda i: (i, 0, 0)),
        ),
        scratch_shapes=[pltpu.VMEM((cin, xp_lanes), jnp.float32)],
        compiler_params=pltpu.CompilerParams(
            dimension_semantics=("parallel",),          # no resident accumulator
            vmem_limit_bytes=32 * 1024 * 1024),
    )(x_flat, w_taps)

    # ---- fold batch statistics to per-channel scale/shift (tiny, plain JAX) ----
    count = jnp.float32(n * hwo)
    sums = jnp.sum(stats, axis=0)                         # (cout, 2)
    mean = sums[:, 0] / count
    var = jnp.maximum(sums[:, 1] / count - mean * mean, 0.0)   # clamp E[z^2]-E[z]^2
    scale = gamma.astype(jnp.float32) * jax.lax.rsqrt(var + eps)
    shift = beta.astype(jnp.float32) - mean * scale
    scale2 = scale.reshape(cout, 1)
    shift2 = shift.reshape(cout, 1)
    # TODO(synk): BatchNorm running_mean/running_var momentum update (training-time
    # buffer mutation) is not modeled; it does not affect the forward output.

    # ---- kernel 2: BN affine + LeakyReLU, lane-dense, pipelined over N ----
    # TODO(synk): for very large Ho*Wo, add a lane-tile grid axis (512-1024 lanes).
    out_flat = pl.pallas_call(
        functools.partial(_bn_lrelu_kernel, slope=slope),
        out_shape=jax.ShapeDtypeStruct((n, cout, hwo), jnp.float32),
        grid=(n,),
        in_specs=[
            pl.BlockSpec((1, cout, hwo), lambda i: (i, 0, 0)),
            pl.BlockSpec((cout, 1), lambda i: (0, 0)),     # resident across steps
            pl.BlockSpec((cout, 1), lambda i: (0, 0)),
        ],
        out_specs=pl.BlockSpec((1, cout, hwo), lambda i: (i, 0, 0)),
        compiler_params=pltpu.CompilerParams(
            dimension_semantics=("parallel",),
            vmem_limit_bytes=32 * 1024 * 1024),
    )(z, scale2, shift2)

    return out_flat.reshape(n, cout, ho, wo)


def _reference(x_nchw, w_oihw, gamma, beta, *, stride=1, eps=1e-5, slope=0.01):
    y = jax.lax.conv_general_dilated(
        x_nchw, w_oihw, window_strides=(stride, stride),
        padding=((1, 1), (1, 1)),
        dimension_numbers=("NCHW", "OIHW", "NCHW"))
    mean = jnp.mean(y, axis=(0, 2, 3), keepdims=True)
    var = jnp.mean((y - mean) ** 2, axis=(0, 2, 3), keepdims=True)
    yn = (y - mean) * jax.lax.rsqrt(var + eps)
    yn = yn * gamma.reshape(1, -1, 1, 1) + beta.reshape(1, -1, 1, 1)
    return jnp.where(yn > 0, yn, slope * yn)


if __name__ == "__main__":
    key = jax.random.PRNGKey(0)
    k_x, k_w, k_g, k_b = jax.random.split(key, 4)

    N, CIN, COUT, H, W = 2, 4, 8, 16, 16

    x = jax.random.normal(k_x, (N, CIN, H, W), dtype=jnp.float32)
    # Conv2d(inp=4, oup=8, kernel=3, stride=1, pad=1, bias=False) weight: (oup, inp, 3, 3)
    conv_w = 0.1 * jax.random.normal(k_w, (COUT, CIN, 3, 3), dtype=jnp.float32)
    # BatchNorm2d(oup) affine params (deterministic, non-trivial values)
    gamma = 1.0 + 0.1 * jax.random.normal(k_g, (COUT,), dtype=jnp.float32)
    beta = 0.1 * jax.random.normal(k_b, (COUT,), dtype=jnp.float32)

    fwd = jax.jit(functools.partial(conv_bn_forward, stride=1))
    out = jax.block_until_ready(fwd(x, conv_w, gamma, beta))

    ref = _reference(x, conv_w, gamma, beta, stride=1)
    assert out.shape == ref.shape == (N, COUT, H, W)
    # Tolerance accounts for bf16 MXU operands (f32 accumulation) vs f32 reference.
    assert jnp.allclose(out, ref, atol=2e-2, rtol=2e-2), \
        f"max abs diff = {jnp.max(jnp.abs(out - ref))}"

    print("KERNEL_OK")
</pallas_src>

<mosaic_0001>
module attributes {stable_mosaic.version = 11 : i64} {
  func.func @_conv_stats_kernel(%arg0: i32, %arg1: memref<1x4x256xf32, #tpu.memory_space<vmem>>, %arg2: memref<9x8x4xbf16, #tpu.memory_space<vmem>>, %arg3: memref<1x8x256xf32, #tpu.memory_space<vmem>>, %arg4: memref<1x8x2xf32, #tpu.memory_space<vmem>>, %arg5: memref<4x512xf32, #tpu.memory_space<vmem>>) attributes {dimension_semantics = [#tpu.dimension_semantics<parallel>], iteration_bounds = array<i64: 2>, scalar_prefetch = 0 : i64, scratch_operands = 1 : i64, tpu.core_type = #tpu.core_type<tc>, window_params = [{transform_indices = @transform_0, window_bounds = array<i64: 1, 4, 256>}, {pipeline_mode = #tpu.pipeline_mode<synchronous>, transform_indices = @transform_1, window_bounds = array<i64: 9, 8, 4>}, {transform_indices = @transform_2, window_bounds = array<i64: 1, 8, 256>}, {transform_indices = @transform_3, window_bounds = array<i64: 1, 8, 2>}]} {
    %cst = arith.constant 0.000000e+00 : f32
    %0 = vector.broadcast %cst : f32 to vector<4x512xf32>
    %c0 = arith.constant 0 : index
    %c0_0 = arith.constant 0 : index
    %1 = vector.load %arg5[%c0, %c0_0] : memref<4x512xf32, #tpu.memory_space<vmem>>, vector<4x512xf32>
    tpu.vector_store %arg5[%c0, %c0_0], %0 {strides = array<i32>} : memref<4x512xf32, #tpu.memory_space<vmem>>, vector<4x512xf32>,
    %c0_1 = arith.constant 0 : index
    %c0_2 = arith.constant 0 : index
    %c0_3 = arith.constant 0 : index
    %2 = vector.load %arg1[%c0_1, %c0_2, %c0_3] : memref<1x4x256xf32, #tpu.memory_space<vmem>>, vector<1x4x16xf32>
    %3 = vector.shape_cast %2 : vector<1x4x16xf32> to vector<4x16xf32>
    %c0_4 = arith.constant 0 : index
    %c19 = arith.constant 19 : index
    %4 = vector.load %arg5[%c0_4, %c19] : memref<4x512xf32, #tpu.memory_space<vmem>>, vector<4x16xf32>
    tpu.vector_store %arg5[%c0_4, %c19], %3 {strides = array<i32>} : memref<4x512xf32, #tpu.memory_space<vmem>>, vector<4x16xf32>,
    %c0_5 = arith.constant 0 : index
    %c0_6 = arith.constant 0 : index
    %c16 = arith.constant 16 : index
    %5 = vector.load %arg1[%c0_5, %c0_6, %c16] : memref<1x4x256xf32, #tpu.memory_space<vmem>>, vector<1x4x16xf32>
    %6 = vector.shape_cast %5 : vector<1x4x16xf32> to vector<4x16xf32>
    %c0_7 = arith.constant 0 : index
    %c37 = arith.constant 37 : index
    %7 = vector.load %arg5[%c0_7, %c37] : memref<4x512xf32, #tpu.memory_space<vmem>>, vector<4x16xf32>
    tpu.vector_store %arg5[%c0_7, %c37], %6 {strides = array<i32>} : memref<4x512xf32, #tpu.memory_space<vmem>>, vector<4x16xf32>,
    %c0_8 = arith.constant 0 : index
    %c0_9 = arith.constant 0 : index
    %c32 = arith.constant 32 : index
    %8 = vector.load %arg1[%c0_8, %c0_9, %c32] : memref<1x4x256xf32, #tpu.memory_space<vmem>>, vector<1x4x16xf32>
    %9 = vector.shape_cast %8 : vector<1x4x16xf32> to vector<4x16xf32>
    %c0_10 = arith.constant 0 : index
    %c55 = arith.constant 55 : index
    %10 = vector.load %arg5[%c0_10, %c55] : memref<4x512xf32, #tpu.memory_space<vmem>>, vector<4x16xf32>
    tpu.vector_store %arg5[%c0_10, %c55], %9 {strides = array<i32>} : memref<4x512xf32, #tpu.memory_space<vmem>>, vector<4x16xf32>,
    %c0_11 = arith.constant 0 : index
    %c0_12 = arith.constant 0 : index
    %c48 = arith.constant 48 : index
    %11 = vector.load %arg1[%c0_11, %c0_12, %c48] : memref<1x4x256xf32, #tpu.memory_space<vmem>>, vector<1x4x16xf32>
    %12 = vector.shape_cast %11 : vector<1x4x16xf32> to vector<4x16xf32>
    %c0_13 = arith.constant 0 : index
    %c73 = arith.constant 73 : index
    %13 = vector.load %arg5[%c0_13, %c73] : memref<4x512xf32, #tpu.memory_space<vmem>>, vector<4x16xf32>
    tpu.vector_store %arg5[%c0_13, %c73], %12 {strides = array<i32>} : memref<4x512xf32, #tpu.memory_space<vmem>>, vector<4x16xf32>,
    %c0_14 = arith.constant 0 : index
    %c0_15 = arith.constant 0 : index
    %c64 = arith.constant 64 : index
    %14 = vector.load %arg1[%c0_14, %c0_15, %c64] : memref<1x4x256xf32, #tpu.memory_space<vmem>>, vector<1x4x16xf32>
    %15 = vector.shape_cast %14 : vector<1x4x16xf32> to vector<4x16xf32>
    %c0_16 = arith.constant 0 : index
    %c91 = arith.constant 91 : index
    %16 = vector.load %arg5[%c0_16, %c91] : memref<4x512xf32, #tpu.memory_space<vmem>>, vector<4x16xf32>
    tpu.vector_store %arg5[%c0_16, %c91], %15 {strides = array<i32>} : memref<4x512xf32, #tpu.memory_space<vmem>>, vector<4x16xf32>,
    %c0_17 = arith.constant 0 : index
    %c0_18 = arith.constant 0 : index
    %c80 = arith.constant 80 : index
    %17 = vector.load %arg1[%c0_17, %c0_18, %c80] : memref<1x4x256xf32, #tpu.memory_space<vmem>>, vector<1x4x16xf32>
    %18 = vector.shape_cast %17 : vector<1x4x16xf32> to vector<4x16xf32>
    %c0_19 = arith.constant 0 : index
    %c109 = arith.constant 109 : index
    %19 = vector.load %arg5[%c0_19, %c109] : memref<4x512xf32, #tpu.memory_space<vmem>>, vector<4x16xf32>
    tpu.vector_store %arg5[%c0_19, %c109], %18 {strides = array<i32>} : memref<4x512xf32, #tpu.memory_space<vmem>>, vector<4x16xf32>,
    %c0_20 = arith.constant 0 : index
    %c0_21 = arith.constant 0 : index
    %c96 = arith.constant 96 : index
    %20 = vector.load %arg1[%c0_20, %c0_21, %c96] : memref<1x4x256xf32, #tpu.memory_space<vmem>>, vector<1x4x16xf32>
    %21 = vector.shape_cast %20 : vector<1x4x16xf32> to vector<4x16xf32>
    %c0_22 = arith.constant 0 : index
    %c127 = arith.constant 127 : index
    %22 = vector.load %arg5[%c0_22, %c127] : memref<4x512xf32, #tpu.memory_space<vmem>>, vector<4x16xf32>
    tpu.vector_store %arg5[%c0_22, %c127], %21 {strides = array<i32>} : memref<4x512xf32, #tpu.memory_space<vmem>>, vector<4x16xf32>,
    %c0_23 = arith.constant 0 : index
    %c0_24 = arith.constant 0 : index
    %c112 = arith.constant 112 : index
    %23 = vector.load %arg1[%c0_23, %c0_24, %c112] : memref<1x4x256xf32, #tpu.memory_space<vmem>>, vector<1x4x16xf32>
    %24 = vector.shape_cast %23 : vector<1x4x16xf32> to vector<4x16xf32>
    %c0_25 = arith.constant 0 : index
    %c145 = arith.constant 145 : index
    %25 = vector.load %arg5[%c0_25, %c145] : memref<4x512xf32, #tpu.memory_space<vmem>>, vector<4x16xf32>
    tpu.vector_store %arg5[%c0_25, %c145], %24 {strides = array<i32>} : memref<4x512xf32, #tpu.memory_space<vmem>>, vector<4x16xf32>,
    %c0_26 = arith.constant 0 : index
    %c0_27 = arith.constant 0 : index
    %c128 = arith.constant 128 : index
    %26 = vector.load %arg1[%c0_26, %c0_27, %c128] : memref<1x4x256xf32, #tpu.memory_space<vmem>>, vector<1x4x16xf32>
    %27 = vector.shape_cast %26 : vector<1x4x16xf32> to vector<4x16xf32>
    %c0_28 = arith.constant 0 : index
    %c163 = arith.constant 163 : index
    %28 = vector.load %arg5[%c0_28, %c163] : memref<4x512xf32, #tpu.memory_space<vmem>>, vector<4x16xf32>
    tpu.vector_store %arg5[%c0_28, %c163], %27 {strides = array<i32>} : memref<4x512xf32, #tpu.memory_space<vmem>>, vector<4x16xf32>,
    %c0_29 = arith.constant 0 : index
    %c0_30 = arith.constant 0 : index
    %c144 = arith.constant 144 : index
    %29 = vector.load %arg1[%c0_29, %c0_30, %c144] : memref<1x4x256xf32, #tpu.memory_space<vmem>>, vector<1x4x16xf32>
    %30 = vector.shape_cast %29 : vector<1x4x16xf32> to vector<4x16xf32>
    %c0_31 = arith.constant 0 : index
    %c181 = arith.constant 181 : index
    %31 = vector.load %arg5[%c0_31, %c181] : memref<4x512xf32, #tpu.memory_space<vmem>>, vector<4x16xf32>
    tpu.vector_store %arg5[%c0_31, %c181], %30 {strides = array<i32>} : memref<4x512xf32, #tpu.memory_space<vmem>>, vector<4x16xf32>,
    %c0_32 = arith.constant 0 : index
    %c0_33 = arith.constant 0 : index
    %c160 = arith.constant 160 : index
    %32 = vector.load %arg1[%c0_32, %c0_33, %c160] : memref<1x4x256xf32, #tpu.memory_space<vmem>>, vector<1x4x16xf32>
    %33 = vector.shape_cast %32 : vector<1x4x16xf32> to vector<4x16xf32>
    %c0_34 = arith.constant 0 : index
    %c199 = arith.constant 199 : index
    %34 = vector.load %arg5[%c0_34, %c199] : memref<4x512xf32, #tpu.memory_space<vmem>>, vector<4x16xf32>
    tpu.vector_store %arg5[%c0_34, %c199], %33 {strides = array<i32>} : memref<4x512xf32, #tpu.memory_space<vmem>>, vector<4x16xf32>,
    %c0_35 = arith.constant 0 : index
    %c0_36 = arith.constant 0 : index
    %c176 = arith.constant 176 : index
    %35 = vector.load %arg1[%c0_35, %c0_36, %c176] : memref<1x4x256xf32, #tpu.memory_space<vmem>>, vector<1x4x16xf32>
    %36 = vector.shape_cast %35 : vector<1x4x16xf32> to vector<4x16xf32>
    %c0_37 = arith.constant 0 : index
    %c217 = arith.constant 217 : index
    %37 = vector.load %arg5[%c0_37, %c217] : memref<4x512xf32, #tpu.memory_space<vmem>>, vector<4x16xf32>
    tpu.vector_store %arg5[%c0_37, %c217], %36 {strides = array<i32>} : memref<4x512xf32, #tpu.memory_space<vmem>>, vector<4x16xf32>,
    %c0_38 = arith.constant 0 : index
    %c0_39 = arith.constant 0 : index
    %c192 = arith.constant 192 : index
    %38 = vector.load %arg1[%c0_38, %c0_39, %c192] : memref<1x4x256xf32, #tpu.memory_space<vmem>>, vector<1x4x16xf32>
    %39 = vector.shape_cast %38 : vector<1x4x16xf32> to vector<4x16xf32>
    %c0_40 = arith.constant 0 : index
    %c235 = arith.constant 235 : index
    %40 = vector.load %arg5[%c0_40, %c235] : memref<4x512xf32, #tpu.memory_space<vmem>>, vector<4x16xf32>
    tpu.vector_store %arg5[%c0_40, %c235], %39 {strides = array<i32>} : memref<4x512xf32, #tpu.memory_space<vmem>>, vector<4x16xf32>,
    %c0_41 = arith.constant 0 : index
    %c0_42 = arith.constant 0 : index
    %c208 = arith.constant 208 : index
    %41 = vector.load %arg1[%c0_41, %c0_42, %c208] : memref<1x4x256xf32, #tpu.memory_space<vmem>>, vector<1x4x16xf32>
    %42 = vector.shape_cast %41 : vector<1x4x16xf32> to vector<4x16xf32>
    %c0_43 = arith.constant 0 : index
    %c253 = arith.constant 253 : index
    %43 = vector.load %arg5[%c0_43, %c253] : memref<4x512xf32, #tpu.memory_space<vmem>>, vector<4x16xf32>
    tpu.vector_store %arg5[%c0_43, %c253], %42 {strides = array<i32>} : memref<4x512xf32, #tpu.memory_space<vmem>>, vector<4x16xf32>,
    %c0_44 = arith.constant 0 : index
    %c0_45 = arith.constant 0 : index
    %c224 = arith.constant 224 : index
    %44 = vector.load %arg1[%c0_44, %c0_45, %c224] : memref<1x4x256xf32, #tpu.memory_space<vmem>>, vector<1x4x16xf32>
    %45 = vector.shape_cast %44 : vector<1x4x16xf32> to vector<4x16xf32>
    %c0_46 = arith.constant 0 : index
    %c271 = arith.constant 271 : index
    %46 = vector.load %arg5[%c0_46, %c271] : memref<4x512xf32, #tpu.memory_space<vmem>>, vector<4x16xf32>
    tpu.vector_store %arg5[%c0_46, %c271], %45 {strides = array<i32>} : memref<4x512xf32, #tpu.memory_space<vmem>>, vector<4x16xf32>,
    %c0_47 = arith.constant 0 : index
    %c0_48 = arith.constant 0 : index
    %c240 = arith.constant 240 : index
    %47 = vector.load %arg1[%c0_47, %c0_48, %c240] : memref<1x4x256xf32, #tpu.memory_space<vmem>>, vector<1x4x16xf32>
    %48 = vector.shape_cast %47 : vector<1x4x16xf32> to vector<4x16xf32>
    %c0_49 = arith.constant 0 : index
    %c289 = arith.constant 289 : index
    %49 = vector.load %arg5[%c0_49, %c289] : memref<4x512xf32, #tpu.memory_space<vmem>>, vector<4x16xf32>
    tpu.vector_store %arg5[%c0_49, %c289], %48 {strides = array<i32>} : memref<4x512xf32, #tpu.memory_space<vmem>>, vector<4x16xf32>,
    %cst_50 = arith.constant 0.000000e+00 : f32
    %50 = vector.broadcast %cst_50 : f32 to vector<8x384xf32>
    %c0_51 = arith.constant 0 : index
    %c0_52 = arith.constant 0 : index
    %c0_53 = arith.constant 0 : index
    %51 = vector.load %arg2[%c0_51, %c0_52, %c0_53] : memref<9x8x4xbf16, #tpu.memory_space<vmem>>, vector<1x8x4xbf16>
    %52 = vector.shape_cast %51 : vector<1x8x4xbf16> to vector<8x4xbf16>
    %c0_54 = arith.constant 0 : index
    %c0_55 = arith.constant 0 : index
    %53 = vector.load %arg5[%c0_54, %c0_55] : memref<4x512xf32, #tpu.memory_space<vmem>>, vector<4x384xf32>
    %54 = arith.truncf %53 : vector<4x384xf32> to vector<4x384xbf16>
    %cst_56 = arith.constant dense<0.000000e+00> : vector<8x384xf32>
    %55 = tpu.matmul %52, %54, %cst_56 {dimension_numbers = #tpu.dot_dimension_numbers<[1], [0], [0], [1], [0, 0, 1, 1], [], []>} : vector<8x4xbf16>, vector<4x384xbf16>, vector<8x384xf32> -> vector<8x384xf32>
    %56 = arith.addf %50, %55 : vector<8x384xf32>
    %c1 = arith.constant 1 : index
    %c0_57 = arith.constant 0 : index
    %c0_58 = arith.constant 0 : index
    %57 = vector.load %arg2[%c1, %c0_57, %c0_58] : memref<9x8x4xbf16, #tpu.memory_space<vmem>>, vector<1x8x4xbf16>
    %58 = vector.shape_cast %57 : vector<1x8x4xbf16> to vector<8x4xbf16>
    %c0_59 = arith.constant 0 : index
    %c1_60 = arith.constant 1 : index
    %59 = vector.load %arg5[%c0_59, %c1_60] : memref<4x512xf32, #tpu.memory_space<vmem>>, vector<4x384xf32>
    %60 = arith.truncf %59 : vector<4x384xf32> to vector<4x384xbf16>
    %cst_61 = arith.constant dense<0.000000e+00> : vector<8x384xf32>
    %61 = tpu.matmul %58, %60, %cst_61 {dimension_numbers = #tpu.dot_dimension_numbers<[1], [0], [0], [1], [0, 0, 1, 1], [], []>} : vector<8x4xbf16>, vector<4x384xbf16>, vector<8x384xf32> -> vector<8x384xf32>
    %62 = arith.addf %56, %61 : vector<8x384xf32>
    %c2 = arith.constant 2 : index
    %c0_62 = arith.constant 0 : index
    %c0_63 = arith.constant 0 : index
    %63 = vector.load %arg2[%c2, %c0_62, %c0_63] : memref<9x8x4xbf16, #tpu.memory_space<vmem>>, vector<1x8x4xbf16>
    %64 = vector.shape_cast %63 : vector<1x8x4xbf16> to vector<8x4xbf16>
    %c0_64 = arith.constant 0 : index
    %c2_65 = arith.constant 2 : index
    %65 = vector.load %arg5[%c0_64, %c2_65] : memref<4x512xf32, #tpu.memory_space<vmem>>, vector<4x384xf32>
    %66 = arith.truncf %65 : vector<4x384xf32> to vector<4x384xbf16>
    %cst_66 = arith.constant dense<0.000000e+00> : vector<8x384xf32>
    %67 = tpu.matmul %64, %66, %cst_66 {dimension_numbers = #tpu.dot_dimension_numbers<[1], [0], [0], [1], [0, 0, 1, 1], [], []>} : vector<8x4xbf16>, vector<4x384xbf16>, vector<8x384xf32> -> vector<8x384xf32>
    %68 = arith.addf %62, %67 : vector<8x384xf32>
    %c3 = arith.constant 3 : index
    %c0_67 = arith.constant 0 : index
    %c0_68 = arith.constant 0 : index
    %69 = vector.load %arg2[%c3, %c0_67, %c0_68] : memref<9x8x4xbf16, #tpu.memory_space<vmem>>, vector<1x8x4xbf16>
    %70 = vector.shape_cast %69 : vector<1x8x4xbf16> to vector<8x4xbf16>
    %c0_69 = arith.constant 0 : index
    %c18 = arith.constant 18 : index
    %71 = vector.load %arg5[%c0_69, %c18] : memref<4x512xf32, #tpu.memory_space<vmem>>, vector<4x384xf32>
    %72 = arith.truncf %71 : vector<4x384xf32> to vector<4x384xbf16>
    %cst_70 = arith.constant dense<0.000000e+00> : vector<8x384xf32>
    %73 = tpu.matmul %70, %72, %cst_70 {dimension_numbers = #tpu.dot_dimension_numbers<[1], [0], [0], [1], [0, 0, 1, 1], [], []>} : vector<8x4xbf16>, vector<4x384xbf16>, vector<8x384xf32> -> vector<8x384xf32>
    %74 = arith.addf %68, %73 : vector<8x384xf32>
    %c4 = arith.constant 4 : index
    %c0_71 = arith.constant 0 : index
    %c0_72 = arith.constant 0 : index
    %75 = vector.load %arg2[%c4, %c0_71, %c0_72] : memref<9x8x4xbf16, #tpu.memory_space<vmem>>, vector<1x8x4xbf16>
    %76 = vector.shape_cast %75 : vector<1x8x4xbf16> to vector<8x4xbf16>
    %c0_73 = arith.constant 0 : index
    %c19_74 = arith.constant 19 : index
    %77 = vector.load %arg5[%c0_73, %c19_74] : memref<4x512xf32, #tpu.memory_space<vmem>>, vector<4x384xf32>
    %78 = arith.truncf %77 : vector<4x384xf32> to vector<4x384xbf16>
    %cst_75 = arith.constant dense<0.000000e+00> : vector<8x384xf32>
    %79 = tpu.matmul %76, %78, %cst_75 {dimension_numbers = #tpu.dot_dimension_numbers<[1], [0], [0], [1], [0, 0, 1, 1], [], []>} : vector<8x4xbf16>, vector<4x384xbf16>, vector<8x384xf32> -> vector<8x384xf32>
    %80 = arith.addf %74, %79 : vector<8x384xf32>
    %c5 = arith.constant 5 : index
    %c0_76 = arith.constant 0 : index
    %c0_77 = arith.constant 0 : index
    %81 = vector.load %arg2[%c5, %c0_76, %c0_77] : memref<9x8x4xbf16, #tpu.memory_space<vmem>>, vector<1x8x4xbf16>
    %82 = vector.shape_cast %81 : vector<1x8x4xbf16> to vector<8x4xbf16>
    %c0_78 = arith.constant 0 : index
    %c20 = arith.constant 20 : index
    %83 = vector.load %arg5[%c0_78, %c20] : memref<4x512xf32, #tpu.memory_space<vmem>>, vector<4x384xf32>
    %84 = arith.truncf %83 : vector<4x384xf32> to vector<4x384xbf16>
    %cst_79 = arith.constant dense<0.000000e+00> : vector<8x384xf32>
    %85 = tpu.matmul %82, %84, %cst_79 {dimension_numbers = #tpu.dot_dimension_numbers<[1], [0], [0], [1], [0, 0, 1, 1], [], []>} : vector<8x4xbf16>, vector<4x384xbf16>, vector<8x384xf32> -> vector<8x384xf32>
    %86 = arith.addf %80, %85 : vector<8x384xf32>
    %c6 = arith.constant 6 : index
    %c0_80 = arith.constant 0 : index
    %c0_81 = arith.constant 0 : index
    %87 = vector.load %arg2[%c6, %c0_80, %c0_81] : memref<9x8x4xbf16, #tpu.memory_space<vmem>>, vector<1x8x4xbf16>
    %88 = vector.shape_cast %87 : vector<1x8x4xbf16> to vector<8x4xbf16>
    %c0_82 = arith.constant 0 : index
    %c36 = arith.constant 36 : index
    %89 = vector.load %arg5[%c0_82, %c36] : memref<4x512xf32, #tpu.memory_space<vmem>>, vector<4x384xf32>
    %90 = arith.truncf %89 : vector<4x384xf32> to vector<4x384xbf16>
    %cst_83 = arith.constant dense<0.000000e+00> : vector<8x384xf32>
    %91 = tpu.matmul %88, %90, %cst_83 {dimension_numbers = #tpu.dot_dimension_numbers<[1], [0], [0], [1], [0, 0, 1, 1], [], []>} : vector<8x4xbf16>, vector<4x384xbf16>, vector<8x384xf32> -> vector<8x384xf32>
    %92 = arith.addf %86, %91 : vector<8x384xf32>
    %c7 = arith.constant 7 : index
    %c0_84 = arith.constant 0 : index
    %c0_85 = arith.constant 0 : index
    %93 = vector.load %arg2[%c7, %c0_84, %c0_85] : memref<9x8x4xbf16, #tpu.memory_space<vmem>>, vector<1x8x4xbf16>
    %94 = vector.shape_cast %93 : vector<1x8x4xbf16> to vector<8x4xbf16>
    %c0_86 = arith.constant 0 : index
    %c37_87 = arith.constant 37 : index
    %95 = vector.load %arg5[%c0_86, %c37_87] : memref<4x512xf32, #tpu.memory_space<vmem>>, vector<4x384xf32>
    %96 = arith.truncf %95 : vector<4x384xf32> to vector<4x384xbf16>
    %cst_88 = arith.constant dense<0.000000e+00> : vector<8x384xf32>
    %97 = tpu.matmul %94, %96, %cst_88 {dimension_numbers = #tpu.dot_dimension_numbers<[1], [0], [0], [1], [0, 0, 1, 1], [], []>} : vector<8x4xbf16>, vector<4x384xbf16>, vector<8x384xf32> -> vector<8x384xf32>
    %98 = arith.addf %92, %97 : vector<8x384xf32>
    %c8 = arith.constant 8 : index
    %c0_89 = arith.constant 0 : index
    %c0_90 = arith.constant 0 : index
    %99 = vector.load %arg2[%c8, %c0_89, %c0_90] : memref<9x8x4xbf16, #tpu.memory_space<vmem>>, vector<1x8x4xbf16>
    %100 = vector.shape_cast %99 : vector<1x8x4xbf16> to vector<8x4xbf16>
    %c0_91 = arith.constant 0 : index
    %c38 = arith.constant 38 : index
    %101 = vector.load %arg5[%c0_91, %c38] : memref<4x512xf32, #tpu.memory_space<vmem>>, vector<4x384xf32>
    %102 = arith.truncf %101 : vector<4x384xf32> to vector<4x384xbf16>
    %cst_92 = arith.constant dense<0.000000e+00> : vector<8x384xf32>
    %103 = tpu.matmul %100, %102, %cst_92 {dimension_numbers = #tpu.dot_dimension_numbers<[1], [0], [0], [1], [0, 0, 1, 1], [], []>} : vector<8x4xbf16>, vector<4x384xbf16>, vector<8x384xf32> -> vector<8x384xf32>
    %104 = arith.addf %98, %103 : vector<8x384xf32>
    %cst_93 = arith.constant 0.000000e+00 : f32
    %105 = vector.broadcast %cst_93 : f32 to vector<8x1xf32>
    %cst_94 = arith.constant 0.000000e+00 : f32
    %106 = vector.broadcast %cst_94 : f32 to vector<8x1xf32>
    %107 = vector.extract_strided_slice %104 {offsets = [0, 0], sizes = [8, 16], strides = [1, 1]} : vector<8x384xf32> to vector<8x16xf32>
    %c0_95 = arith.constant 0 : index
    %c0_96 = arith.constant 0 : index
    %c0_97 = arith.constant 0 : index
    %108 = vector.load %arg3[%c0_95, %c0_96, %c0_97] : memref<1x8x256xf32, #tpu.memory_space<vmem>>, vector<1x8x16xf32>
    %109 = vector.shape_cast %108 : vector<1x8x16xf32> to vector<8x16xf32>
    %110 = vector.shape_cast %107 : vector<8x16xf32> to vector<1x8x16xf32>
    tpu.vector_store %arg3[%c0_95, %c0_96, %c0_97], %110 {strides = array<i32>} : memref<1x8x256xf32, #tpu.memory_space<vmem>>, vector<1x8x16xf32>,
    %cst_98 = arith.constant dense<0.000000e+00> : vector<8xf32>
    %111 = vector.multi_reduction <add>, %107, %cst_98 [1] : vector<8x16xf32> to vector<8xf32>
    %112 = vector.shape_cast %111 : vector<8xf32> to vector<8x1xf32>
    %113 = arith.addf %105, %112 : vector<8x1xf32>
    %114 = arith.mulf %107, %107 : vector<8x16xf32>
    %cst_99 = arith.constant dense<0.000000e+00> : vector<8xf32>
    %115 = vector.multi_reduction <add>, %114, %cst_99 [1] : vector<8x16xf32> to vector<8xf32>
    %116 = vector.shape_cast %115 : vector<8xf32> to vector<8x1xf32>
    %117 = arith.addf %106, %116 : vector<8x1xf32>
    %118 = vector.extract_strided_slice %104 {offsets = [0, 18], sizes = [8, 16], strides = [1, 1]} : vector<8x384xf32> to vector<8x16xf32>
    %c0_100 = arith.constant 0 : index
    %c0_101 = arith.constant 0 : index
    %c16_102 = arith.constant 16 : index
    %119 = vector.load %arg3[%c0_100, %c0_101, %c16_102] : memref<1x8x256xf32, #tpu.memory_space<vmem>>, vector<1x8x16xf32>
    %120 = vector.shape_cast %119 : vector<1x8x16xf32> to vector<8x16xf32>
    %121 = vector.shape_cast %118 : vector<8x16xf32> to vector<1x8x16xf32>
    tpu.vector_store %arg3[%c0_100, %c0_101, %c16_102], %121 {strides = array<i32>} : memref<1x8x256xf32, #tpu.memory_space<vmem>>, vector<1x8x16xf32>,
    %cst_103 = arith.constant dense<0.000000e+00> : vector<8xf32>
    %122 = vector.multi_reduction <add>, %118, %cst_103 [1] : vector<8x16xf32> to vector<8xf32>
    %123 = vector.shape_cast %122 : vector<8xf32> to vector<8x1xf32>
    %124 = arith.addf %113, %123 : vector<8x1xf32>
    %125 = arith.mulf %118, %118 : vector<8x16xf32>
    %cst_104 = arith.constant dense<0.000000e+00> : vector<8xf32>
    %126 = vector.multi_reduction <add>, %125, %cst_104 [1] : vector<8x16xf32> to vector<8xf32>
    %127 = vector.shape_cast %126 : vector<8xf32> to vector<8x1xf32>
    %128 = arith.addf %117, %127 : vector<8x1xf32>
    %129 = vector.extract_strided_slice %104 {offsets = [0, 36], sizes = [8, 16], strides = [1, 1]} : vector<8x384xf32> to vector<8x16xf32>
    %c0_105 = arith.constant 0 : index
    %c0_106 = arith.constant 0 : index
    %c32_107 = arith.constant 32 : index
    %130 = vector.load %arg3[%c0_105, %c0_106, %c32_107] : memref<1x8x256xf32, #tpu.memory_space<vmem>>, vector<1x8x16xf32>
    %131 = vector.shape_cast %130 : vector<1x8x16xf32> to vector<8x16xf32>
    %132 = vector.shape_cast %129 : vector<8x16xf32> to vector<1x8x16xf32>
    tpu.vector_store %arg3[%c0_105, %c0_106, %c32_107], %132 {strides = array<i32>} : memref<1x8x256xf32, #tpu.memory_space<vmem>>, vector<1x8x16xf32>,
    %cst_108 = arith.constant dense<0.000000e+00> : vector<8xf32>
    %133 = vector.multi_reduction <add>, %129, %cst_108 [1] : vector<8x16xf32> to vector<8xf32>
    %134 = vector.shape_cast %133 : vector<8xf32> to vector<8x1xf32>
    %135 = arith.addf %124, %134 : vector<8x1xf32>
    %136 = arith.mulf %129, %129 : vector<8x16xf32>
    %cst_109 = arith.constant dense<0.000000e+00> : vector<8xf32>
    %137 = vector.multi_reduction <add>, %136, %cst_109 [1] : vector<8x16xf32> to vector<8xf32>
    %138 = vector.shape_cast %137 : vector<8xf32> to vector<8x1xf32>
    %139 = arith.addf %128, %138 : vector<8x1xf32>
    %140 = vector.extract_strided_slice %104 {offsets = [0, 54], sizes = [8, 16], strides = [1, 1]} : vector<8x384xf32> to vector<8x16xf32>
    %c0_110 = arith.constant 0 : index
    %c0_111 = arith.constant 0 : index
    %c48_112 = arith.constant 48 : index
    %141 = vector.load %arg3[%c0_110, %c0_111, %c48_112] : memref<1x8x256xf32, #tpu.memory_space<vmem>>, vector<1x8x16xf32>
    %142 = vector.shape_cast %141 : vector<1x8x16xf32> to vector<8x16xf32>
    %143 = vector.shape_cast %140 : vector<8x16xf32> to vector<1x8x16xf32>
    tpu.vector_store %arg3[%c0_110, %c0_111, %c48_112], %143 {strides = array<i32>} : memref<1x8x256xf32, #tpu.memory_space<vmem>>, vector<1x8x16xf32>,
    %cst_113 = arith.constant dense<0.000000e+00> : vector<8xf32>
    %144 = vector.multi_reduction <add>, %140, %cst_113 [1] : vector<8x16xf32> to vector<8xf32>
    %145 = vector.shape_cast %144 : vector<8xf32> to vector<8x1xf32>
    %146 = arith.addf %135, %145 : vector<8x1xf32>
    %147 = arith.mulf %140, %140 : vector<8x16xf32>
    %cst_114 = arith.constant dense<0.000000e+00> : vector<8xf32>
    %148 = vector.multi_reduction <add>, %147, %cst_114 [1] : vector<8x16xf32> to vector<8xf32>
    %149 = vector.shape_cast %148 : vector<8xf32> to vector<8x1xf32>
    %150 = arith.addf %139, %149 : vector<8x1xf32>
    %151 = vector.extract_strided_slice %104 {offsets = [0, 72], sizes = [8, 16], strides = [1, 1]} : vector<8x384xf32> to vector<8x16xf32>
    %c0_115 = arith.constant 0 : index
    %c0_116 = arith.constant 0 : index
    %c64_117 = arith.constant 64 : index
    %152 = vector.load %arg3[%c0_115, %c0_116, %c64_117] : memref<1x8x256xf32, #tpu.memory_space<vmem>>, vector<1x8x16xf32>
    %153 = vector.shape_cast %152 : vector<1x8x16xf32> to vector<8x16xf32>
    %154 = vector.shape_cast %151 : vector<8x16xf32> to vector<1x8x16xf32>
    tpu.vector_store %arg3[%c0_115, %c0_116, %c64_117], %154 {strides = array<i32>} : memref<1x8x256xf32, #tpu.memory_space<vmem>>, vector<1x8x16xf32>,
    %cst_118 = arith.constant dense<0.000000e+00> : vector<8xf32>
    %155 = vector.multi_reduction <add>, %151, %cst_118 [1] : vector<8x16xf32> to vector<8xf32>
    %156 = vector.shape_cast %155 : vector<8xf32> to vector<8x1xf32>
    %157 = arith.addf %146, %156 : vector<8x1xf32>
    %158 = arith.mulf %151, %151 : vector<8x16xf32>
    %cst_119 = arith.constant dense<0.000000e+00> : vector<8xf32>
    %159 = vector.multi_reduction <add>, %158, %cst_119 [1] : vector<8x16xf32> to vector<8xf32>
    %160 = vector.shape_cast %159 : vector<8xf32> to vector<8x1xf32>
    %161 = arith.addf %150, %160 : vector<8x1xf32>
    %162 = vector.extract_strided_slice %104 {offsets = [0, 90], sizes = [8, 16], strides = [1, 1]} : vector<8x384xf32> to vector<8x16xf32>
    %c0_120 = arith.constant 0 : index
    %c0_121 = arith.constant 0 : index
    %c80_122 = arith.constant 80 : index
    %163 = vector.load %arg3[%c0_120, %c0_121, %c80_122] : memref<1x8x256xf32, #tpu.memory_space<vmem>>, vector<1x8x16xf32>
    %164 = vector.shape_cast %163 : vector<1x8x16xf32> to vector<8x16xf32>
    %165 = vector.shape_cast %162 : vector<8x16xf32> to vector<1x8x16xf32>
    tpu.vector_store %arg3[%c0_120, %c0_121, %c80_122], %165 {strides = array<i32>} : memref<1x8x256xf32, #tpu.memory_space<vmem>>, vector<1x8x16xf32>,
    %cst_123 = arith.constant dense<0.000000e+00> : vector<8xf32>
    %166 = vector.multi_reduction <add>, %162, %cst_123 [1] : vector<8x16xf32> to vector<8xf32>
    %167 = vector.shape_cast %166 : vector<8xf32> to vector<8x1xf32>
    %168 = arith.addf %157, %167 : vector<8x1xf32>
    %169 = arith.mulf %162, %162 : vector<8x16xf32>
    %cst_124 = arith.constant dense<0.000000e+00> : vector<8xf32>
    %170 = vector.multi_reduction <add>, %169, %cst_124 [1] : vector<8x16xf32> to vector<8xf32>
    %171 = vector.shape_cast %170 : vector<8xf32> to vector<8x1xf32>
    %172 = arith.addf %161, %171 : vector<8x1xf32>
    %173 = vector.extract_strided_slice %104 {offsets = [0, 108], sizes = [8, 16], strides = [1, 1]} : vector<8x384xf32> to vector<8x16xf32>
    %c0_125 = arith.constant 0 : index
    %c0_126 = arith.constant 0 : index
    %c96_127 = arith.constant 96 : index
    %174 = vector.load %arg3[%c0_125, %c0_126, %c96_127] : memref<1x8x256xf32, #tpu.memory_space<vmem>>, vector<1x8x16xf32>
    %175 = vector.shape_cast %174 : vector<1x8x16xf32> to vector<8x16xf32>
    %176 = vector.shape_cast %173 : vector<8x16xf32> to vector<1x8x16xf32>
    tpu.vector_store %arg3[%c0_125, %c0_126, %c96_127], %176 {strides = array<i32>} : memref<1x8x256xf32, #tpu.memory_space<vmem>>, vector<1x8x16xf32>,
    %cst_128 = arith.constant dense<0.000000e+00> : vector<8xf32>
    %177 = vector.multi_reduction <add>, %173, %cst_128 [1] : vector<8x16xf32> to vector<8xf32>
    %178 = vector.shape_cast %177 : vector<8xf32> to vector<8x1xf32>
    %179 = arith.addf %168, %178 : vector<8x1xf32>
    %180 = arith.mulf %173, %173 : vector<8x16xf32>
    %cst_129 = arith.constant dense<0.000000e+00> : vector<8xf32>
    %181 = vector.multi_reduction <add>, %180, %cst_129 [1] : vector<8x16xf32> to vector<8xf32>
    %182 = vector.shape_cast %181 : vector<8xf32> to vector<8x1xf32>
    %183 = arith.addf %172, %182 : vector<8x1xf32>
    %184 = vector.extract_strided_slice %104 {offsets = [0, 126], sizes = [8, 16], strides = [1, 1]} : vector<8x384xf32> to vector<8x16xf32>
    %c0_130 = arith.constant 0 : index
    %c0_131 = arith.constant 0 : index
    %c112_132 = arith.constant 112 : index
    %185 = vector.load %arg3[%c0_130, %c0_131, %c112_132] : memref<1x8x256xf32, #tpu.memory_space<vmem>>, vector<1x8x16xf32>
    %186 = vector.shape_cast %185 : vector<1x8x16xf32> to vector<8x16xf32>
    %187 = vector.shape_cast %184 : vector<8x16xf32> to vector<1x8x16xf32>
    tpu.vector_store %arg3[%c0_130, %c0_131, %c112_132], %187 {strides = array<i32>} : memref<1x8x256xf32, #tpu.memory_space<vmem>>, vector<1x8x16xf32>,
    %cst_133 = arith.constant dense<0.000000e+00> : vector<8xf32>
    %188 = vector.multi_reduction <add>, %184, %cst_133 [1] : vector<8x16xf32> to vector<8xf32>
    %189 = vector.shape_cast %188 : vector<8xf32> to vector<8x1xf32>
    %190 = arith.addf %179, %189 : vector<8x1xf32>
    %191 = arith.mulf %184, %184 : vector<8x16xf32>
    %cst_134 = arith.constant dense<0.000000e+00> : vector<8xf32>
    %192 = vector.multi_reduction <add>, %191, %cst_134 [1] : vector<8x16xf32> to vector<8xf32>
    %193 = vector.shape_cast %192 : vector<8xf32> to vector<8x1xf32>
    %194 = arith.addf %183, %193 : vector<8x1xf32>
    %195 = vector.extract_strided_slice %104 {offsets = [0, 144], sizes = [8, 16], strides = [1, 1]} : vector<8x384xf32> to vector<8x16xf32>
    %c0_135 = arith.constant 0 : index
    %c0_136 = arith.constant 0 : index
    %c128_137 = arith.constant 128 : index
    %196 = vector.load %arg3[%c0_135, %c0_136, %c128_137] : memref<1x8x256xf32, #tpu.memory_space<vmem>>, vector<1x8x16xf32>
    %197 = vector.shape_cast %196 : vector<1x8x16xf32> to vector<8x16xf32>
    %198 = vector.shape_cast %195 : vector<8x16xf32> to vector<1x8x16xf32>
    tpu.vector_store %arg3[%c0_135, %c0_136, %c128_137], %198 {strides = array<i32>} : memref<1x8x256xf32, #tpu.memory_space<vmem>>, vector<1x8x16xf32>,
    %cst_138 = arith.constant dense<0.000000e+00> : vector<8xf32>
    %199 = vector.multi_reduction <add>, %195, %cst_138 [1] : vector<8x16xf32> to vector<8xf32>
    %200 = vector.shape_cast %199 : vector<8xf32> to vector<8x1xf32>
    %201 = arith.addf %190, %200 : vector<8x1xf32>
    %202 = arith.mulf %195, %195 : vector<8x16xf32>
    %cst_139 = arith.constant dense<0.000000e+00> : vector<8xf32>
    %203 = vector.multi_reduction <add>, %202, %cst_139 [1] : vector<8x16xf32> to vector<8xf32>
    %204 = vector.shape_cast %203 : vector<8xf32> to vector<8x1xf32>
    %205 = arith.addf %194, %204 : vector<8x1xf32>
    %206 = vector.extract_strided_slice %104 {offsets = [0, 162], sizes = [8, 16], strides = [1, 1]} : vector<8x384xf32> to vector<8x16xf32>
    %c0_140 = arith.constant 0 : index
    %c0_141 = arith.constant 0 : index
    %c144_142 = arith.constant 144 : index
    %207 = vector.load %arg3[%c0_140, %c0_141, %c144_142] : memref<1x8x256xf32, #tpu.memory_space<vmem>>, vector<1x8x16xf32>
    %208 = vector.shape_cast %207 : vector<1x8x16xf32> to vector<8x16xf32>
    %209 = vector.shape_cast %206 : vector<8x16xf32> to vector<1x8x16xf32>
    tpu.vector_store %arg3[%c0_140, %c0_141, %c144_142], %209 {strides = array<i32>} : memref<1x8x256xf32, #tpu.memory_space<vmem>>, vector<1x8x16xf32>,
    %cst_143 = arith.constant dense<0.000000e+00> : vector<8xf32>
    %210 = vector.multi_reduction <add>, %206, %cst_143 [1] : vector<8x16xf32> to vector<8xf32>
    %211 = vector.shape_cast %210 : vector<8xf32> to vector<8x1xf32>
    %212 = arith.addf %201, %211 : vector<8x1xf32>
    %213 = arith.mulf %206, %206 : vector<8x16xf32>
    %cst_144 = arith.constant dense<0.000000e+00> : vector<8xf32>
    %214 = vector.multi_reduction <add>, %213, %cst_144 [1] : vector<8x16xf32> to vector<8xf32>
    %215 = vector.shape_cast %214 : vector<8xf32> to vector<8x1xf32>
    %216 = arith.addf %205, %215 : vector<8x1xf32>
    %217 = vector.extract_strided_slice %104 {offsets = [0, 180], sizes = [8, 16], strides = [1, 1]} : vector<8x384xf32> to vector<8x16xf32>
    %c0_145 = arith.constant 0 : index
    %c0_146 = arith.constant 0 : index
    %c160_147 = arith.constant 160 : index
    %218 = vector.load %arg3[%c0_145, %c0_146, %c160_147] : memref<1x8x256xf32, #tpu.memory_space<vmem>>, vector<1x8x16xf32>
    %219 = vector.shape_cast %218 : vector<1x8x16xf32> to vector<8x16xf32>
    %220 = vector.shape_cast %217 : vector<8x16xf32> to vector<1x8x16xf32>
    tpu.vector_store %arg3[%c0_145, %c0_146, %c160_147], %220 {strides = array<i32>} : memref<1x8x256xf32, #tpu.memory_space<vmem>>, vector<1x8x16xf32>,
    %cst_148 = arith.constant dense<0.000000e+00> : vector<8xf32>
    %221 = vector.multi_reduction <add>, %217, %cst_148 [1] : vector<8x16xf32> to vector<8xf32>
    %222 = vector.shape_cast %221 : vector<8xf32> to vector<8x1xf32>
    %223 = arith.addf %212, %222 : vector<8x1xf32>
    %224 = arith.mulf %217, %217 : vector<8x16xf32>
    %cst_149 = arith.constant dense<0.000000e+00> : vector<8xf32>
    %225 = vector.multi_reduction <add>, %224, %cst_149 [1] : vector<8x16xf32> to vector<8xf32>
    %226 = vector.shape_cast %225 : vector<8xf32> to vector<8x1xf32>
    %227 = arith.addf %216, %226 : vector<8x1xf32>
    %228 = vector.extract_strided_slice %104 {offsets = [0, 198], sizes = [8, 16], strides = [1, 1]} : vector<8x384xf32> to vector<8x16xf32>
    %c0_150 = arith.constant 0 : index
    %c0_151 = arith.constant 0 : index
    %c176_152 = arith.constant 176 : index
    %229 = vector.load %arg3[%c0_150, %c0_151, %c176_152] : memref<1x8x256xf32, #tpu.memory_space<vmem>>, vector<1x8x16xf32>
    %230 = vector.shape_cast %229 : vector<1x8x16xf32> to vector<8x16xf32>
    %231 = vector.shape_cast %228 : vector<8x16xf32> to vector<1x8x16xf32>
    tpu.vector_store %arg3[%c0_150, %c0_151, %c176_152], %231 {strides = array<i32>} : memref<1x8x256xf32, #tpu.memory_space<vmem>>, vector<1x8x16xf32>,
    %cst_153 = arith.constant dense<0.000000e+00> : vector<8xf32>
    %232 = vector.multi_reduction <add>, %228, %cst_153 [1] : vector<8x16xf32> to vector<8xf32>
    %233 = vector.shape_cast %232 : vector<8xf32> to vector<8x1xf32>
    %234 = arith.addf %223, %233 : vector<8x1xf32>
    %235 = arith.mulf %228, %228 : vector<8x16xf32>
    %cst_154 = arith.constant dense<0.000000e+00> : vector<8xf32>
    %236 = vector.multi_reduction <add>, %235, %cst_154 [1] : vector<8x16xf32> to vector<8xf32>
    %237 = vector.shape_cast %236 : vector<8xf32> to vector<8x1xf32>
    %238 = arith.addf %227, %237 : vector<8x1xf32>
    %239 = vector.extract_strided_slice %104 {offsets = [0, 216], sizes = [8, 16], strides = [1, 1]} : vector<8x384xf32> to vector<8x16xf32>
    %c0_155 = arith.constant 0 : index
    %c0_156 = arith.constant 0 : index
    %c192_157 = arith.constant 192 : index
    %240 = vector.load %arg3[%c0_155, %c0_156, %c192_157] : memref<1x8x256xf32, #tpu.memory_space<vmem>>, vector<1x8x16xf32>
    %241 = vector.shape_cast %240 : vector<1x8x16xf32> to vector<8x16xf32>
    %242 = vector.shape_cast %239 : vector<8x16xf32> to vector<1x8x16xf32>
    tpu.vector_store %arg3[%c0_155, %c0_156, %c192_157], %242 {strides = array<i32>} : memref<1x8x256xf32, #tpu.memory_space<vmem>>, vector<1x8x16xf32>,
    %cst_158 = arith.constant dense<0.000000e+00> : vector<8xf32>
    %243 = vector.multi_reduction <add>, %239, %cst_158 [1] : vector<8x16xf32> to vector<8xf32>
    %244 = vector.shape_cast %243 : vector<8xf32> to vector<8x1xf32>
    %245 = arith.addf %234, %244 : vector<8x1xf32>
    %246 = arith.mulf %239, %239 : vector<8x16xf32>
    %cst_159 = arith.constant dense<0.000000e+00> : vector<8xf32>
    %247 = vector.multi_reduction <add>, %246, %cst_159 [1] : vector<8x16xf32> to vector<8xf32>
    %248 = vector.shape_cast %247 : vector<8xf32> to vector<8x1xf32>
    %249 = arith.addf %238, %248 : vector<8x1xf32>
    %250 = vector.extract_strided_slice %104 {offsets = [0, 234], sizes = [8, 16], strides = [1, 1]} : vector<8x384xf32> to vector<8x16xf32>
    %c0_160 = arith.constant 0 : index
    %c0_161 = arith.constant 0 : index
    %c208_162 = arith.constant 208 : index
    %251 = vector.load %arg3[%c0_160, %c0_161, %c208_162] : memref<1x8x256xf32, #tpu.memory_space<vmem>>, vector<1x8x16xf32>
    %252 = vector.shape_cast %251 : vector<1x8x16xf32> to vector<8x16xf32>
    %253 = vector.shape_cast %250 : vector<8x16xf32> to vector<1x8x16xf32>
    tpu.vector_store %arg3[%c0_160, %c0_161, %c208_162], %253 {strides = array<i32>} : memref<1x8x256xf32, #tpu.memory_space<vmem>>, vector<1x8x16xf32>,
    %cst_163 = arith.constant dense<0.000000e+00> : vector<8xf32>
    %254 = vector.multi_reduction <add>, %250, %cst_163 [1] : vector<8x16xf32> to vector<8xf32>
    %255 = vector.shape_cast %254 : vector<8xf32> to vector<8x1xf32>
    %256 = arith.addf %245, %255 : vector<8x1xf32>
    %257 = arith.mulf %250, %250 : vector<8x16xf32>
    %cst_164 = arith.constant dense<0.000000e+00> : vector<8xf32>
    %258 = vector.multi_reduction <add>, %257, %cst_164 [1] : vector<8x16xf32> to vector<8xf32>
    %259 = vector.shape_cast %258 : vector<8xf32> to vector<8x1xf32>
    %260 = arith.addf %249, %259 : vector<8x1xf32>
    %261 = vector.extract_strided_slice %104 {offsets = [0, 252], sizes = [8, 16], strides = [1, 1]} : vector<8x384xf32> to vector<8x16xf32>
    %c0_165 = arith.constant 0 : index
    %c0_166 = arith.constant 0 : index
    %c224_167 = arith.constant 224 : index
    %262 = vector.load %arg3[%c0_165, %c0_166, %c224_167] : memref<1x8x256xf32, #tpu.memory_space<vmem>>, vector<1x8x16xf32>
    %263 = vector.shape_cast %262 : vector<1x8x16xf32> to vector<8x16xf32>
    %264 = vector.shape_cast %261 : vector<8x16xf32> to vector<1x8x16xf32>
    tpu.vector_store %arg3[%c0_165, %c0_166, %c224_167], %264 {strides = array<i32>} : memref<1x8x256xf32, #tpu.memory_space<vmem>>, vector<1x8x16xf32>,
    %cst_168 = arith.constant dense<0.000000e+00> : vector<8xf32>
    %265 = vector.multi_reduction <add>, %261, %cst_168 [1] : vector<8x16xf32> to vector<8xf32>
    %266 = vector.shape_cast %265 : vector<8xf32> to vector<8x1xf32>
    %267 = arith.addf %256, %266 : vector<8x1xf32>
    %268 = arith.mulf %261, %261 : vector<8x16xf32>
    %cst_169 = arith.constant dense<0.000000e+00> : vector<8xf32>
    %269 = vector.multi_reduction <add>, %268, %cst_169 [1] : vector<8x16xf32> to vector<8xf32>
    %270 = vector.shape_cast %269 : vector<8xf32> to vector<8x1xf32>
    %271 = arith.addf %260, %270 : vector<8x1xf32>
    %272 = vector.extract_strided_slice %104 {offsets = [0, 270], sizes = [8, 16], strides = [1, 1]} : vector<8x384xf32> to vector<8x16xf32>
    %c0_170 = arith.constant 0 : index
    %c0_171 = arith.constant 0 : index
    %c240_172 = arith.constant 240 : index
    %273 = vector.load %arg3[%c0_170, %c0_171, %c240_172] : memref<1x8x256xf32, #tpu.memory_space<vmem>>, vector<1x8x16xf32>
    %274 = vector.shape_cast %273 : vector<1x8x16xf32> to vector<8x16xf32>
    %275 = vector.shape_cast %272 : vector<8x16xf32> to vector<1x8x16xf32>
    tpu.vector_store %arg3[%c0_170, %c0_171, %c240_172], %275 {strides = array<i32>} : memref<1x8x256xf32, #tpu.memory_space<vmem>>, vector<1x8x16xf32>,
    %cst_173 = arith.constant dense<0.000000e+00> : vector<8xf32>
    %276 = vector.multi_reduction <add>, %272, %cst_173 [1] : vector<8x16xf32> to vector<8xf32>
    %277 = vector.shape_cast %276 : vector<8xf32> to vector<8x1xf32>
    %278 = arith.addf %267, %277 : vector<8x1xf32>
    %279 = arith.mulf %272, %272 : vector<8x16xf32>
    %cst_174 = arith.constant dense<0.000000e+00> : vector<8xf32>
    %280 = vector.multi_reduction <add>, %279, %cst_174 [1] : vector<8x16xf32> to vector<8xf32>
    %281 = vector.shape_cast %280 : vector<8xf32> to vector<8x1xf32>
    %282 = arith.addf %271, %281 : vector<8x1xf32>
    %283 = tpu.concatenate %278, %282 in 1 : vector<8x1xf32>, vector<8x1xf32> -> vector<8x2xf32>
    %c0_175 = arith.constant 0 : index
    %c0_176 = arith.constant 0 : index
    %c0_177 = arith.constant 0 : index
    %284 = vector.load %arg4[%c0_175, %c0_176, %c0_177] : memref<1x8x2xf32, #tpu.memory_space<vmem>>, vector<1x8x2xf32>
    %285 = vector.shape_cast %284 : vector<1x8x2xf32> to vector<8x2xf32>
    %286 = vector.shape_cast %283 : vector<8x2xf32> to vector<1x8x2xf32>
    tpu.vector_store %arg4[%c0_175, %c0_176, %c0_177], %286 {strides = array<i32>} : memref<1x8x2xf32, #tpu.memory_space<vmem>>, vector<1x8x2xf32>,
    return
  }
  func.func @transform_0(%arg0: i32) -> (i32, i32, i32) {
    %c0_i32 = arith.constant 0 : i32
    %c0_i32_0 = arith.constant 0 : i32
    %c0_i32_1 = arith.constant 0 : i32
    return %arg0, %c0_i32, %c0_i32_0 : i32, i32, i32
  }
  func.func @transform_1(%arg0: i32) -> (i32, i32, i32) {
    %c0_i32 = arith.constant 0 : i32
    %c0_i32_0 = arith.constant 0 : i32
    %c0_i32_1 = arith.constant 0 : i32
    %c0_i32_2 = arith.constant 0 : i32
    return %c0_i32, %c0_i32_0, %c0_i32_1 : i32, i32, i32
  }
  func.func @transform_2(%arg0: i32) -> (i32, i32, i32) {
    %c0_i32 = arith.constant 0 : i32
    %c0_i32_0 = arith.constant 0 : i32
    %c0_i32_1 = arith.constant 0 : i32
    return %arg0, %c0_i32, %c0_i32_0 : i32, i32, i32
  }
  func.func @transform_3(%arg0: i32) -> (i32, i32, i32) {
    %c0_i32 = arith.constant 0 : i32
    %c0_i32_0 = arith.constant 0 : i32
    %c0_i32_1 = arith.constant 0 : i32
    return %arg0, %c0_i32, %c0_i32_0 : i32, i32, i32
  }
}

module attributes {stable_mosaic.version = 11 : i64} {
  func.func @_bn_lrelu_kernel(%arg0: i32, %arg1: memref<1x8x256xf32, #tpu.memory_space<vmem>>, %arg2: memref<8x1xf32, #tpu.memory_space<vmem>>, %arg3: memref<8x1xf32, #tpu.memory_space<vmem>>, %arg4: memref<1x8x256xf32, #tpu.memory_space<vmem>>) attributes {dimension_semantics = [#tpu.dimension_semantics<parallel>], iteration_bounds = array<i64: 2>, scalar_prefetch = 0 : i64, scratch_operands = 0 : i64, tpu.core_type = #tpu.core_type<tc>, window_params = [{transform_indices = @transform_0, window_bounds = array<i64: 1, 8, 256>}, {pipeline_mode = #tpu.pipeline_mode<synchronous>, transform_indices = @transform_1, window_bounds = array<i64: 8, 1>}, {pipeline_mode = #tpu.pipeline_mode<synchronous>, transform_indices = @transform_2, window_bounds = array<i64: 8, 1>}, {transform_indices = @transform_3, window_bounds = array<i64: 1, 8, 256>}]} {
    %c0 = arith.constant 0 : index
    %c0_0 = arith.constant 0 : index
    %c0_1 = arith.constant 0 : index
    %0 = vector.load %arg1[%c0, %c0_0, %c0_1] : memref<1x8x256xf32, #tpu.memory_space<vmem>>, vector<1x8x256xf32>
    %c0_2 = arith.constant 0 : index
    %c0_3 = arith.constant 0 : index
    %1 = vector.load %arg2[%c0_2, %c0_3] : memref<8x1xf32, #tpu.memory_space<vmem>>, vector<8x1xf32>
    %2 = vector.shape_cast %1 : vector<8x1xf32> to vector<1x8x1xf32>
    %3 = vector.broadcast %2 : vector<1x8x1xf32> to vector<1x8x256xf32>
    %4 = arith.mulf %0, %3 : vector<1x8x256xf32>
    %c0_4 = arith.constant 0 : index
    %c0_5 = arith.constant 0 : index
    %5 = vector.load %arg3[%c0_4, %c0_5] : memref<8x1xf32, #tpu.memory_space<vmem>>, vector<8x1xf32>
    %6 = vector.shape_cast %5 : vector<8x1xf32> to vector<1x8x1xf32>
    %7 = vector.broadcast %6 : vector<1x8x1xf32> to vector<1x8x256xf32>
    %8 = arith.addf %4, %7 : vector<1x8x256xf32>
    %cst = arith.constant 0.000000e+00 : f32
    %9 = vector.broadcast %cst : f32 to vector<1x8x256xf32>
    %10 = arith.cmpf ogt, %8, %9 : vector<1x8x256xf32>
    %cst_6 = arith.constant 0.00999999977 : f32
    %11 = vector.broadcast %cst_6 : f32 to vector<1x8x256xf32>
    %12 = arith.mulf %11, %8 : vector<1x8x256xf32>
    %13 = arith.select %10, %8, %12 : vector<1x8x256xi1>, vector<1x8x256xf32>
    %c0_7 = arith.constant 0 : index
    %c0_8 = arith.constant 0 : index
    %c0_9 = arith.constant 0 : index
    %14 = vector.load %arg4[%c0_7, %c0_8, %c0_9] : memref<1x8x256xf32, #tpu.memory_space<vmem>>, vector<1x8x256xf32>
    tpu.vector_store %arg4[%c0_7, %c0_8, %c0_9], %13 {strides = array<i32>} : memref<1x8x256xf32, #tpu.memory_space<vmem>>, vector<1x8x256xf32>,
    return
  }
  func.func @transform_0(%arg0: i32) -> (i32, i32, i32) {
    %c0_i32 = arith.constant 0 : i32
    %c0_i32_0 = arith.constant 0 : i32
    %c0_i32_1 = arith.constant 0 : i32
    return %arg0, %c0_i32, %c0_i32_0 : i32, i32, i32
  }
  func.func @transform_1(%arg0: i32) -> (i32, i32) {
    %c0_i32 = arith.constant 0 : i32
    %c0_i32_0 = arith.constant 0 : i32
    %c0_i32_1 = arith.constant 0 : i32
    return %c0_i32, %c0_i32_0 : i32, i32
  }
  func.func @transform_2(%arg0: i32) -> (i32, i32) {
    %c0_i32 = arith.constant 0 : i32
    %c0_i32_0 = arith.constant 0 : i32
    %c0_i32_1 = arith.constant 0 : i32
    return %c0_i32, %c0_i32_0 : i32, i32
  }
  func.func @transform_3(%arg0: i32) -> (i32, i32, i32) {
    %c0_i32 = arith.constant 0 : i32
    %c0_i32_0 = arith.constant 0 : i32
    %c0_i32_1 = arith.constant 0 : i32
    return %arg0, %c0_i32, %c0_i32_0 : i32, i32, i32
  }
}

</mosaic_0001>

<bundles_post_ra>
// kernel: conv_bn_forward.3
= control target key start
LH: loop header
LB: loop body
LE: loop exit
PB: predicated region body
PF: predicated region fallthrough
CT: control target
= control target key end

     0   :  { %s304_s12 = smov 0   ;;  %s327_s0 = inlined_call_operand.vmem [shape: f32[2,8,256], index: 0, kind: input, shape index: {}]   ;;  %s328_s1 = inlined_call_operand.vmem [shape: f32[8,1], index: 1, kind: input, shape index: {}]   ;;  %s329_s2 = inlined_call_operand.vmem [shape: f32[8,1], index: 2, kind: input, shape index: {}]   ;;  %s330_s3 = inlined_call_operand.vmem [shape: f32[2,8,256], index: 3, kind: output, shape index: {}]  }
   0x1 LB: > { %s252_s13 = sadd.s32 4294967295, %s281_s12   ;;  %p256_p0 = scmp.ge.s32.totalorder %s281_s12, 1  ;;  %s281_s12 = sphi %s304_s12, %s13_s12  }
   0x2   : > { %p137_p1 = scmp.lt.s32.totalorder %s281_s12, 3 }
   0x4   : > { %p138_p2 = pnand %p256_p0, %p137_p1 }
   0x5   : > { %p161_p3 = scmp.lt.s32.totalorder (!%p138_p2), %s252_s13, 1 }
   0x6   : > { %141 = sbr.rel (%p138_p2) target bundleno = 143 (0x8f), region = 32 }
   0xb   : > { %v173_v0 = vld [vmem:[%s328_s1] sm:$0xff]  ;;  %v283_v1 = vmov 0   ;;  %s332_s13 = smov (!%p161_p3, %s252_s13), 1 }
   0xc   : > { %274 = vset.pattern.permute.xlu0 %v283_v1  ;;  %v181_v2 = vld [vmem:[%s329_s2] sm:$0xff]  ;;  %s263_s18 = sshll.u32 %s332_s13, 4 }
   0xd   : > { %176 = vperm.xlu0 %274, %v173_v0   ;;  %s165_s21 = scalar_lea.vmem %s327_s0, %s263_s18  ;;  %s170_s24 = scalar_lea.vmem %s330_s3, %s263_s18 }
   0xe   : > { %v171_v4 = vld [vmem:[%s165_s21] sm:$0xff]  ;;  %v172_v5 = vld [vmem:[%s165_s21 + $0x8] sm:$0xff] }
  0x15   : > { %184 = vperm.xlu0 %274, %v181_v2  }
  0x7f   : > { %v177_v3 = vpop.permute.xlu0 %176 }
  0x80   : > { %v179_v6 = vmul.f32 %v177_v3, %v171_v4  ;;  %v180_v7 = vmul.f32 %v177_v3, %v172_v5 }
  0x87   : > { %v185_v8 = vpop.permute.xlu0 %184 }
  0x88   : > { %v187_v9 = vadd.f32 %v185_v8, %v179_v6  ;;  %v188_v10 = vadd.f32 %v185_v8, %v180_v7 }
  0x8a   : > { %vm189_vm0 = vcmp.gt.f32.partialorder %v187_v9, 0.0  ;;  %vm190_vm1 = vcmp.gt.f32.partialorder %v188_v10, 0.0  ;;  %v191_v11 = vmul.f32 0.01, %v187_v9  ;;  %v192_v12 = vmul.f32 0.01, %v188_v10 }
  0x8c   : > { %v193_v13 = vsel %vm189_vm0, %v187_v9, %v191_v11  ;;  %v194_v14 = vsel %vm190_vm1, %v188_v10, %v192_v12 }
  0x8d   : > { %195 = vst [vmem:[%s170_s24] sm:$0xff] %v193_v13 }
  0x8e   : > { %196 = vst [vmem:[%s170_s24 + $0x8] sm:$0xff] %v194_v14 }
  0x8f PF: > { %s13_s12 = sadd.s32 1, %s281_s12  }
  0x90   : > { %p10_p4 = scmp.ge.s32.totalorder %s13_s12, 4  }
  0x92   :  { %12 = sbr.rel (!%p10_p4) target bundleno = 1 (0x1), region = 62 }

// kernel: conv_bn_forward.2
= control target key start
LH: loop header
LB: loop body
LE: loop exit
PB: predicated region body
PF: predicated region fallthrough
CT: control target
= control target key end

     0   :  { %s1686_s12 = smov 0   ;;  %s2011_s0 = inlined_call_operand.vmem [shape: f32[2,4,256], index: 0, kind: input, shape index: {}]   ;;  %s2012_s1 = inlined_call_operand.vmem [shape: bf16[9,8,4], index: 1, kind: input, shape index: {}]   ;;  %s2013_s2 = inlined_call_operand.vmem [shape: f32[2,8,256], index: 2, kind: output, shape index: {0}]   ;;  %s2014_s3 = inlined_call_operand.vmem [shape: f32[2,8,2], index: 3, kind: output, shape index: {1}]  }
   0x1 LB: > { %s1505_s13 = sadd.s32 4294967295, %s1616_s12   ;;  %p1509_p0 = scmp.ge.s32.totalorder %s1616_s12, 1  ;;  %s1616_s12 = sphi %s1686_s12, %s14_s12  }
   0x2   : > { %p140_p1 = scmp.lt.s32.totalorder %s1616_s12, 3 }
   0x4   : > { %p141_p2 = pnand %p1509_p0, %p140_p1 }
   0x5   : > { %p168_p3 = scmp.lt.s32.totalorder (!%p141_p2), %s1505_s13, 1  ;;  %s1618_s18 = smov (!%p141_p2), 23  }
   0x6   : > { %144 = sbr.rel (%p141_p2) target bundleno = 1227 (0x4cb), region = 28  ;;  %s1619_s19 = smov (!%p141_p2), 19  }
   0x7   : > { %s1620_s20 = smov (!%p141_p2), 27   ;;  %s1621_s21 = smov (!%p141_p2), 25  }
   0x8   : > { %s1622_s22 = smov (!%p141_p2), 21   ;;  %s1623_s23 = smov (!%p141_p2), 29  }
   0x9   : > { %s1624_s24 = smov (!%p141_p2), 33   ;;  %s1625_s25 = smov (!%p141_p2), 31  }
   0xa   : > { %s1626_s26 = smov (!%p141_p2), 35   ;;  %s1627_s27 = smov (!%p141_p2), 39  }
   0xb   : > { %s2016_s13 = smov (!%p168_p3, %s1505_s13), 1  ;;  %s1628_s28 = smov 37   ;;  %v1634_v16 = vmov 0.0   ;;  %vm190_vm0 = vcmask 281752   ;;  %vm197_vm1 = vcmask 429352   ;;  %vm204_vm2 = vcmask 576952  }
   0xc   : > { %s1552_s14 = sshll.u32 %s2016_s13, 3  ;;  %s1629_s29 = smov 41   ;;  %183 = vst [vmem:[#allocation2] sm:$0xff] %v1634_v16  ;;  %vm211_vm3 = vcmask 724552   ;;  %vm218_vm4 = vcmask 872152   ;;  %vm225_vm5 = vcmask 1019752  }
   0xd   : > { %s1702_s17 = scalar_lea.vmem %s2011_s0, %s1552_s14  ;;  %s1630_s30 = smov 45   ;;  %184 = vst [vmem:[#allocation2 + $0x8] sm:$0xff] %v1634_v16  ;;  %vm235_vm6 = vcmask 1044472   ;;  %vm236_vm7 = vcmask 121860   ;;  %vm232_vm8 = vcmask 252928   ;;  %vm244_vm10 = vcmask 265352  }
   0xe   : > { %v199_v0 = vld [vmem:[%s1702_s17] sm:$0xf]  ;;  %v246_v8 = vld [vmem:[%s1702_s17 + $0x4] sm:$0xf]  ;;  %s1631_s4 = smov 43   ;;  %s1632_s5 = smov 47   ;;  %vm237_vm9 = vmor %vm236_vm7, %vm235_vm6 }
   0xf   : > { %v185_v1 = vld [vmem:[%s1702_s17] sm:$0xf]  ;;  %201 = vrot.lane.b32.xlu1 %v199_v0, %s1618_s18  ;;  %v260_v9 = vld [vmem:[%s1702_s17 + $0x4] sm:$0xf]  ;;  %s1633_s6 = smov 49   ;;  %vm251_vm11 = vcmask 412952  }
  0x10   : > { %187 = vrot.lane.b32.xlu0 %v185_v1, %s1619_s19  ;;  %v213_v2 = vld [vmem:[%s1702_s17] sm:$0xf]  ;;  %v253_v10 = vld [vmem:[%s1702_s17 + $0x4] sm:$0xf]  ;;  %vm258_vm12 = vcmask 560552   ;;  %vm265_vm13 = vcmask 708152  }
  0x11   : > { %215 = vrot.lane.b32.xlu2 %v213_v2, %s1620_s20  ;;  %v206_v3 = vld [vmem:[%s1702_s17] sm:$0xf]  ;;  %v267_v11 = vld [vmem:[%s1702_s17 + $0x4] sm:$0xf]  ;;  %vm272_vm14 = vcmask 855752   ;;  %vm279_vm15 = vcmask 1003352  }
  0x12   : > { %v192_v4 = vld [vmem:[%s1702_s17] sm:$0xf]  ;;  %v281_v12 = vld [vmem:[%s1702_s17 + $0x4] sm:$0xf]  ;;  %vm365_vm6 = vcmask 1041408   ;;  %s1635_s7 = smov 127  }
  0x13   : > { %v220_v5 = vld [vmem:[%s1702_s17] sm:$0xf]  ;;  %v274_v13 = vld [vmem:[%s1702_s17 + $0x4] sm:$0xf]  ;;  %s1636_s8 = smov 126   ;;  %s1637_s9 = smov 110  }
  0x14   : > { %v239_v6 = vld [vmem:[%s1702_s17] sm:$0xf]  ;;  %v293_v14 = vld [vmem:[%s1702_s17 + $0x4] sm:$0xf]  ;;  %s1638_s10 = smov 109   ;;  %s1639_s11 = smov 108  }
  0x15   : > { %v227_v7 = vld [vmem:[%s1702_s17] sm:$0xf]  ;;  %v300_v15 = vld [vmem:[%s1702_s17 + $0x4] sm:$0xf]  ;;  %s1640_s15 = smov 92   ;;  %s1641_s16 = smov 91  }
  0x16   : > { %s1642_s17 = smov 90   ;;  %vm361_vm7 = vcmask 31744   ;;  %s1643_s20 = smov 120  }
  0x17   : > { %208 = vrot.lane.b32.xlu1 %v206_v3, %s1621_s21  ;;  %s1644_s21 = smov 124   ;;  %s1665_s18 = smov 98  }
  0x18   : > { %194 = vrot.lane.b32.xlu0 %v192_v4, %s1622_s22  ;;  %s1645_s22 = smov 38  }
  0x19   : > { %222 = vrot.lane.b32.xlu2 %v220_v5, %s1623_s23  ;;  %s1646_s23 = smov 122  }
  0x1f   : > { %241 = vrot.lane.b32.xlu1 %v239_v6, %s1624_s24  ;;  %s1647_s24 = smov 116  }
  0x20   : > { %229 = vrot.lane.b32.xlu0 %v227_v7, %s1625_s25  ;;  %s1648_s25 = smov 74  }
  0x21   : > { %248 = vrot.lane.b32.xlu2 %v246_v8, %s1626_s26  ;;  %s1650_s26 = smov 118  }
  0x27   : > { %262 = vrot.lane.b32.xlu1 %v260_v9, %s1627_s27  ;;  %s1651_s27 = smov 56  }
  0x28   : > { %255 = vrot.lane.b32.xlu0 %v253_v10, %s1628_s28  ;;  %s1652_s28 = smov 114  }
  0x29   : > { %269 = vrot.lane.b32.xlu2 %v267_v11, %s1629_s29  ;;  %s1653_s29 = smov 20  }
  0x2f   : > { %283 = vrot.lane.b32.xlu1 %v281_v12, %s1630_s30  ;;  %s1654_s30 = smov 112  }
  0x30   : > { %276 = vrot.lane.b32.xlu0 %v274_v13, %s1631_s4  ;;  %s1655_s4 = smov 76  }
  0x31   : > { %295 = vrot.lane.b32.xlu2 %v293_v14, %s1632_s5  ;;  %s1657_s5 = smov 94  }
  0x38   : > { %302 = vrot.lane.b32.xlu0 %v300_v15, %s1633_s6  ;;  %s1659_s6 = smov 58  }
  0x6b   : > { %v216_v17 = vpop.permute.xlu2 %215 }
  0x73   : > { %v223_v20 = vpop.permute.xlu2 %222 }
  0x7b   : > { %v249_v23 = vpop.permute.xlu2 %248 }
  0x81   : > { %v202_v18 = vpop.permute.xlu1 %201 }
  0x82   : > { %v188_v19 = vpop.permute.xlu0 %187 }
  0x83   : > { %191 = vst.msk [vmem:[#allocation2] sm:$0xf] %vm190_vm0, %v188_v19  ;;  %v270_v28 = vpop.permute.xlu2 %269  ;;  %vm289_vm0 = vcmask 1044456  }
  0x89   : > { %v209_v21 = vpop.permute.xlu1 %208 }
  0x8a   : > { %v195_v22 = vpop.permute.xlu0 %194 }
  0x8b   : > { %198 = vst.msk [vmem:[#allocation2] sm:$0xf] %vm197_vm1, %v195_v22  ;;  %vm290_vm1 = vcmask 105476   ;;  %v296_v34 = vpop.permute.xlu2 %295 }
  0x8c   : > { %205 = vst.msk [vmem:[#allocation2] sm:$0xf] %vm204_vm2, %v202_v18  ;;  %vm286_vm2 = vcmask 367616  }
  0x8d   : > { %212 = vst.msk [vmem:[#allocation2] sm:$0xf] %vm211_vm3, %v209_v21  ;;  %vm291_vm3 = vmor %vm290_vm1, %vm289_vm0  ;;  %vm1102_vm0 = vcmask 130048   ;;  %vm1117_vm1 = vcmask 261248  }
  0x8e   : > { %219 = vst.msk [vmem:[#allocation2] sm:$0xf] %vm218_vm4, %v216_v17  ;;  %vm298_vm4 = vcmask 248952  }
  0x8f   : > { %226 = vst.msk [vmem:[#allocation2] sm:$0xf] %vm225_vm5, %v223_v20  ;;  %vm305_vm5 = vcmask 396552  }
  0x91   : > { %v242_v24 = vpop.permute.xlu1 %241 }
  0x92   : > { %v230_v25 = vpop.permute.xlu0 %229 }
  0x93   : > { %v231_v26 = vrot.slane %v230_v25, 4 }
  0x95   : > { %v233_v27 = vsel %vm232_vm8, %v231_v26, %v230_v25  ;;  %vm357_vm8 = vcmask 1039360  }
  0x96   : > { %238 = vst.msk [vmem:[#allocation2] sm:$0xff] %vm237_vm9, %v233_v27  ;;  %vm498_vm9 = vcmask 1031168  }
  0x97   : > { %245 = vst.msk [vmem:[#allocation2 + $0x4] sm:$0xf] %vm244_vm10, %v242_v24  ;;  %vm589_vm10 = vcmask 900096  }
  0x98   : > { %252 = vst.msk [vmem:[#allocation2 + $0x4] sm:$0xf] %vm251_vm11, %v249_v23  ;;  %vm680_vm11 = vcmask 891904  }
  0x99   : > { %v263_v29 = vpop.permute.xlu1 %262 }
  0x9a   : > { %v256_v30 = vpop.permute.xlu0 %255 }
  0x9b   : > { %259 = vst.msk [vmem:[#allocation2 + $0x4] sm:$0xf] %vm258_vm12, %v256_v30  ;;  %vm771_vm12 = vcmask 883712  }
  0x9c   : > { %266 = vst.msk [vmem:[#allocation2 + $0x4] sm:$0xf] %vm265_vm13, %v263_v29  ;;  %vm862_vm13 = vcmask 752640  }
  0x9d   : > { %273 = vst.msk [vmem:[#allocation2 + $0x4] sm:$0xf] %vm272_vm14, %v270_v28  ;;  %vm953_vm14 = vcmask 744448  }
  0xa1   : > { %v284_v31 = vpop.permute.xlu1 %283 }
  0xa2   : > { %v277_v32 = vpop.permute.xlu0 %276  ;;  %v285_v33 = vrot.slane %v284_v31, 4 }
  0xa3   : > { %280 = vst.msk [vmem:[#allocation2 + $0x4] sm:$0xf] %vm279_vm15, %v277_v32  ;;  %vm1044_vm15 = vcmask 736256  }
  0xa4   : > { %v287_v35 = vsel %vm286_vm2, %v285_v33, %v284_v31  ;;  %vm1137_vm2 = vcmask 392448  }
  0xa5   : > { %292 = vst.msk [vmem:[#allocation2 + $0x4] sm:$0xff] %vm291_vm3, %v287_v35  ;;  %vm1156_vm3 = vcmask 523648  }
  0xa6   : > { %299 = vst.msk [vmem:[#allocation2 + $0x8] sm:$0xf] %vm298_vm4, %v296_v34  ;;  %vm1175_vm4 = vcmask 654848  }
  0xaa   : > { %v303_v36 = vpop.permute.xlu0 %302 }
  0xab   : > { %306 = vst.msk [vmem:[#allocation2 + $0x8] sm:$0xf] %vm305_vm5, %v303_v36  ;;  %vm1194_vm5 = vcmask 786048  }
  0xac   : > { %v1720_v37 = vld [vmem:[#allocation2] sm:$0xff] }
  0xad   : > { %312 = vst [vmem:[#allocation1] ss:$2 sm:$0xff] %v1720_v37 }
  0xb2   : > { %v309_v38 = vld [vmem:[#allocation2 + $0x8] sm:$0xf] }
  0xb3   : > { %314 = vst [vmem:[#allocation1 + $0x10] ss:$2 sm:$0xff] %v309_v38  ;;  %v1726_v42 = vld [vmem:[#allocation2 + $0x8] sm:$0xff] }
  0xb4   : > { %v315_v39 = vld.sshfl [vmem:[#allocation1] sm:$0xff pattern:$0x75316420]  ;;  %v1723_v40 = vld.sshfl [vmem:[#allocation1 + $0x8] sm:$0xff pattern:$0x75316420] }
  0xb5   : > { %v321_v41 = vpack.c.bf16 %v315_v39, %v315_v39  ;;  %330 = vst [vmem:[#allocation1] ss:$2 sm:$0xff] %v1720_v37 }
  0xb7   : > { %v418_v43 = vsel %vm365_vm6, %v321_v41, 0 }
  0xb8   : > { %433 = vmatpush.bf16.msra.mxu3 %v418_v43 }
  0xba   : > { %v1729_v44 = vld.sshfl [vmem:[#allocation1 + $0x10] sm:$0xff pattern:$0x75316420] }
  0xbb   : > { %332 = vst [vmem:[#allocation1 + $0x10] ss:$2 sm:$0xff] %v1726_v42 }
  0xbc   : > { %v334_v45 = vld.sshfl [vmem:[#allocation1 + $0x8] sm:$0xff pattern:$0x75316420]  ;;  %v333_v46 = vld.sshfl [vmem:[#allocation1] sm:$0xff pattern:$0x75316420] }
  0xbd   : > { %v342_v47 = vpack.c.bf16 %v334_v45, %v334_v45  ;;  %v341_v48 = vpack.c.bf16 %v333_v46, %v333_v46  ;;  %471 = vst [vmem:[#allocation1] ss:$2 sm:$0xff] %v1720_v37 }
  0xbf   : > { %351 = vrot.lane.b32.xlu2 %v342_v47, %s1635_s7  ;;  %349 = vrot.lane.b32.xlu1 %v341_v48, %s1635_s7  ;;  %v307_v47 = vld [vmem:[%s2012_s1] sm:$0xf] }
  0xc0   : > { %1519 = vmatmul.msk.bf16.vlgmr.msra.gmra.mxu3 %vm361_vm7, %v307_v47 }
  0xc2   : > { %v335_v49 = vld.sshfl [vmem:[#allocation1 + $0x10] sm:$0xff pattern:$0x75316420]  ;;  %v336_v50 = vld.sshfl [vmem:[#allocation1 + $0x18] sm:$0xff pattern:$0x75316420] }
  0xc3   : > { %v343_v51 = vpack.c.bf16 %v335_v49, %v335_v49  ;;  %473 = vst [vmem:[#allocation1 + $0x10] ss:$2 sm:$0xff] %v1726_v42  ;;  %v344_v55 = vpack.c.bf16 %v336_v50, %v336_v50  ;;  %v322_v50 = vpack.c.bf16 %v1723_v40, %v1723_v40 }
  0xc4   : > { %v474_v52 = vld.sshfl [vmem:[#allocation1] sm:$0xff pattern:$0x75316420]  ;;  %v475_v53 = vld.sshfl [vmem:[#allocation1 + $0x8] sm:$0xff pattern:$0x75316420] }
  0xc5   : > { %353 = vrot.lane.b32.xlu0 %v343_v51, %s1635_s7  ;;  %v482_v54 = vpack.c.bf16 %v474_v52, %v474_v52  ;;  %562 = vst [vmem:[#allocation1] ss:$2 sm:$0xff] %v1720_v37  ;;  %v483_v58 = vpack.c.bf16 %v475_v53, %v475_v53 }
  0xc7   : > { %490 = vrot.lane.b32.xlu2 %v482_v54, %s1636_s8  ;;  %355 = vrot.lane.b32.xlu1 %v344_v55, %s1635_s7  ;;  %v421_v55 = vsel %vm365_vm6, %v322_v50, 0  ;;  %s1660_s7 = smov 22  }
  0xca   : > { %v477_v56 = vld.sshfl [vmem:[#allocation1 + $0x18] sm:$0xff pattern:$0x75316420]  ;;  %v476_v57 = vld.sshfl [vmem:[#allocation1 + $0x10] sm:$0xff pattern:$0x75316420] }
  0xcb   : > { %564 = vst [vmem:[#allocation1 + $0x10] ss:$2 sm:$0xff] %v1726_v42  ;;  %v485_v61 = vpack.c.bf16 %v477_v56, %v477_v56  ;;  %v484_v62 = vpack.c.bf16 %v476_v57, %v476_v57  ;;  %v1515_v56 = vld [vmem:[%s2012_s1 + $0x4] sm:$0xf]  ;;  %v323_v57 = vpack.c.bf16 %v1729_v44, %v1729_v44 }
  0xcc   : > { %v565_v59 = vld.sshfl [vmem:[#allocation1] sm:$0xff pattern:$0x75316420]  ;;  %v566_v60 = vld.sshfl [vmem:[#allocation1 + $0x8] sm:$0xff pattern:$0x75316420] }
  0xcd   : > { %492 = vrot.lane.b32.xlu0 %v483_v58, %s1636_s8  ;;  %653 = vst [vmem:[#allocation1] ss:$2 sm:$0xff] %v1720_v37  ;;  %v573_v1 = vpack.c.bf16 %v565_v59, %v565_v59  ;;  %v574_v5 = vpack.c.bf16 %v566_v60, %v566_v60 }
  0xcf   : > { %496 = vrot.lane.b32.xlu2 %v485_v61, %s1636_s8  ;;  %494 = vrot.lane.b32.xlu1 %v484_v62, %s1636_s8  ;;  %v424_v61 = vsel %vm365_vm6, %v323_v57, 0  ;;  %v1538_v57 = vld [vmem:[%s2012_s1 + $0x18] sm:$0xf] }
  0xd2   : > { %v567_v63 = vld.sshfl [vmem:[#allocation1 + $0x10] sm:$0xff pattern:$0x75316420]  ;;  %v568_v0 = vld.sshfl [vmem:[#allocation1 + $0x18] sm:$0xff pattern:$0x75316420] }
  0xd3   : > { %655 = vst [vmem:[#allocation1 + $0x10] ss:$2 sm:$0xff] %v1726_v42  ;;  %v575_v4 = vpack.c.bf16 %v567_v63, %v567_v63  ;;  %v576_v8 = vpack.c.bf16 %v568_v0, %v568_v0 }
  0xd4   : > { %v657_v2 = vld.sshfl [vmem:[#allocation1 + $0x8] sm:$0xff pattern:$0x75316420]  ;;  %v656_v3 = vld.sshfl [vmem:[#allocation1] sm:$0xff pattern:$0x75316420] }
  0xd5   : > { %581 = vrot.lane.b32.xlu0 %v573_v1, %s1637_s9  ;;  %744 = vst [vmem:[#allocation1] ss:$2 sm:$0xff] %v1720_v37  ;;  %v665_v11 = vpack.c.bf16 %v657_v2, %v657_v2  ;;  %v664_v12 = vpack.c.bf16 %v656_v3, %v656_v3 }
  0xd7   : > { %585 = vrot.lane.b32.xlu2 %v575_v4, %s1637_s9  ;;  %583 = vrot.lane.b32.xlu1 %v574_v5, %s1637_s9 }
  0xda   : > { %v658_v6 = vld.sshfl [vmem:[#allocation1 + $0x10] sm:$0xff pattern:$0x75316420]  ;;  %v659_v7 = vld.sshfl [vmem:[#allocation1 + $0x18] sm:$0xff pattern:$0x75316420] }
  0xdb   : > { %746 = vst [vmem:[#allocation1 + $0x10] ss:$2 sm:$0xff] %v1726_v42  ;;  %v666_v15 = vpack.c.bf16 %v658_v6, %v658_v6  ;;  %v667_v19 = vpack.c.bf16 %v659_v7, %v659_v7 }
  0xdc   : > { %v747_v9 = vld.sshfl [vmem:[#allocation1] sm:$0xff pattern:$0x75316420]  ;;  %v748_v10 = vld.sshfl [vmem:[#allocation1 + $0x8] sm:$0xff pattern:$0x75316420] }
  0xdd   : > { %587 = vrot.lane.b32.xlu0 %v576_v8, %s1637_s9  ;;  %835 = vst [vmem:[#allocation1] ss:$2 sm:$0xff] %v1720_v37  ;;  %v755_v18 = vpack.c.bf16 %v747_v9, %v747_v9  ;;  %v756_v22 = vpack.c.bf16 %v748_v10, %v748_v10  ;;  %v1522_v8 = vld [vmem:[%s2012_s1 + $0x8] sm:$0xf] }
  0xdf   : > { %674 = vrot.lane.b32.xlu2 %v665_v11, %s1638_s10  ;;  %672 = vrot.lane.b32.xlu1 %v664_v12, %s1638_s10 }
  0xe2   : > { %v750_v13 = vld.sshfl [vmem:[#allocation1 + $0x18] sm:$0xff pattern:$0x75316420]  ;;  %v749_v14 = vld.sshfl [vmem:[#allocation1 + $0x10] sm:$0xff pattern:$0x75316420] }
  0xe3   : > { %837 = vst [vmem:[#allocation1 + $0x10] ss:$2 sm:$0xff] %v1726_v42  ;;  %v758_v25 = vpack.c.bf16 %v750_v13, %v750_v13  ;;  %v757_v26 = vpack.c.bf16 %v749_v14, %v749_v14 }
  0xe4   : > { %v838_v16 = vld.sshfl [vmem:[#allocation1] sm:$0xff pattern:$0x75316420]  ;;  %v839_v17 = vld.sshfl [vmem:[#allocation1 + $0x8] sm:$0xff pattern:$0x75316420] }
  0xe5   : > { %676 = vrot.lane.b32.xlu0 %v666_v15, %s1638_s10  ;;  %926 = vst [vmem:[#allocation1] ss:$2 sm:$0xff] %v1720_v37  ;;  %v846_v29 = vpack.c.bf16 %v838_v16, %v838_v16  ;;  %v847_v31 = vpack.c.bf16 %v839_v17, %v839_v17 }
  0xe7   : > { %763 = vrot.lane.b32.xlu2 %v755_v18, %s1639_s11  ;;  %678 = vrot.lane.b32.xlu1 %v667_v19, %s1638_s10  ;;  %s1661_s10 = smov 106  }
  0xea   : > { %v840_v20 = vld.sshfl [vmem:[#allocation1 + $0x10] sm:$0xff pattern:$0x75316420]  ;;  %v841_v21 = vld.sshfl [vmem:[#allocation1 + $0x18] sm:$0xff pattern:$0x75316420] }
  0xeb   : > { %928 = vst [vmem:[#allocation1 + $0x10] ss:$2 sm:$0xff] %v1726_v42  ;;  %v848_v30 = vpack.c.bf16 %v840_v20, %v840_v20  ;;  %v849_v32 = vpack.c.bf16 %v841_v21, %v841_v21 }
  0xec   : > { %v930_v23 = vld.sshfl [vmem:[#allocation1 + $0x8] sm:$0xff pattern:$0x75316420]  ;;  %v929_v24 = vld.sshfl [vmem:[#allocation1] sm:$0xff pattern:$0x75316420] }
  0xed   : > { %765 = vrot.lane.b32.xlu0 %v756_v22, %s1639_s11  ;;  %1017 = vst [vmem:[#allocation1] ss:$2 sm:$0xff] %v1720_v37  ;;  %v938_v33 = vpack.c.bf16 %v930_v23, %v930_v23  ;;  %v937_v34 = vpack.c.bf16 %v929_v24, %v929_v24  ;;  %v1526_v23 = vld [vmem:[%s2012_s1 + $0xc] sm:$0xf] }
  0xef   : > { %769 = vrot.lane.b32.xlu2 %v758_v25, %s1639_s11  ;;  %767 = vrot.lane.b32.xlu1 %v757_v26, %s1639_s11 }
  0xf2   : > { %v931_v27 = vld.sshfl [vmem:[#allocation1 + $0x10] sm:$0xff pattern:$0x75316420]  ;;  %v932_v28 = vld.sshfl [vmem:[#allocation1 + $0x18] sm:$0xff pattern:$0x75316420] }
  0xf3   : > { %1019 = vst [vmem:[#allocation1 + $0x10] ss:$2 sm:$0xff] %v1726_v42  ;;  %v939_v35 = vpack.c.bf16 %v931_v27, %v931_v27  ;;  %v940_v38 = vpack.c.bf16 %v932_v28, %v932_v28 }
  0xf4   : > { %v1020_v36 = vld.sshfl [vmem:[#allocation1] sm:$0xff pattern:$0x75316420]  ;;  %v1021_v39 = vld.sshfl [vmem:[#allocation1 + $0x8] sm:$0xff pattern:$0x75316420] }
  0xf5   : > { %854 = vrot.lane.b32.xlu0 %v846_v29, %s1640_s15  ;;  %v1028_v37 = vpack.c.bf16 %v1020_v36, %v1020_v36  ;;  %v1029_v41 = vpack.c.bf16 %v1021_v39, %v1021_v39 }
  0xf7   : > { %858 = vrot.lane.b32.xlu2 %v848_v30, %s1640_s15  ;;  %856 = vrot.lane.b32.xlu1 %v847_v31, %s1640_s15 }
  0xfa   : > { %v1023_v42 = vld.sshfl [vmem:[#allocation1 + $0x18] sm:$0xff pattern:$0x75316420]  ;;  %v1022_v43 = vld.sshfl [vmem:[#allocation1 + $0x10] sm:$0xff pattern:$0x75316420] }
  0xfb   : > { %v1031_v45 = vpack.c.bf16 %v1023_v42, %v1023_v42  ;;  %v1030_v46 = vpack.c.bf16 %v1022_v43, %v1022_v43  ;;  %v1534_v42 = vld [vmem:[%s2012_s1 + $0x14] sm:$0xf] }
  0xfd   : > { %860 = vrot.lane.b32.xlu0 %v849_v32, %s1640_s15 }
  0xff   : > { %947 = vrot.lane.b32.xlu2 %v938_v33, %s1641_s16  ;;  %945 = vrot.lane.b32.xlu1 %v937_v34, %s1641_s16 }
 0x105   : > { %949 = vrot.lane.b32.xlu0 %v939_v35, %s1641_s16 }
 0x107   : > { %1036 = vrot.lane.b32.xlu2 %v1028_v37, %s1642_s17  ;;  %951 = vrot.lane.b32.xlu1 %v940_v38, %s1641_s16  ;;  %s1553_s16 = sshll.u32 %s2016_s13, 4 }
 0x108   : > { %s1859_s19 = scalar_lea.vmem %s2013_s2, %s1553_s16  ;;  %s1662_s16 = smov 104  }
 0x10d   : > { %1038 = vrot.lane.b32.xlu0 %v1029_v41, %s1642_s17  ;;  %v1530_v41 = vld [vmem:[%s2012_s1 + $0x10] sm:$0xf] }
 0x10f   : > { %1042 = vrot.lane.b32.xlu2 %v1031_v45, %s1642_s17  ;;  %1040 = vrot.lane.b32.xlu1 %v1030_v46, %s1642_s17  ;;  %s1664_s17 = smov 100  }
 0x119   : > { %v352_v48 = vpop.permute.xlu2 %351 }
 0x121   : > { %v491_v49 = vpop.permute.xlu2 %490 }
 0x129   : > { %v497_v51 = vpop.permute.xlu2 %496 }
 0x131   : > { %v350_v52 = vpop.permute.xlu1 %349  ;;  %v586_v63 = vpop.permute.xlu2 %585 }
 0x132   : > { %v358_v53 = vsel %vm357_vm8, %v350_v52, %v352_v48 }
 0x133   : > { %v367_v54 = vsel %vm365_vm6, %v358_v53, 0 }
 0x134   : > { %382 = vmatpush.bf16.msra.mxu0 %v367_v54 }
 0x137   : > { %v354_v58 = vpop.permute.xlu0 %353  ;;  %1516 = vmatmul.msk.bf16.vlgmr.msra.gmra.mxu0 %vm361_vm7, %v1515_v56 }
 0x138   : > { %446 = vmatpush.bf16.msrb.mxu0 %v421_v55  ;;  %v359_v40 = vsel %vm357_vm8, %v352_v48, %v354_v58 }
 0x139   : > { %v370_v59 = vsel %vm365_vm6, %v359_v40, 0  ;;  %v356_v60 = vpop.permute.xlu1 %355  ;;  %v675_v9 = vpop.permute.xlu2 %674 }
 0x13a   : > { %395 = vmatpush.bf16.msra.mxu1 %v370_v59  ;;  %v360_v62 = vsel %vm357_vm8, %v354_v58, %v356_v60  ;;  %vm1234_vm8 = vcmask 932864  }
 0x13b   : > { %v373_v0 = vsel %vm365_vm6, %v360_v62, 0 }
 0x13c   : > { %408 = vmatpush.bf16.msra.mxu2 %v373_v0 }
 0x13d   : > { %1517 = vmatmul.msk.bf16.vlgmr.msra.gmra.mxu1 %vm361_vm7, %v1515_v56 }
 0x13e   : > { %459 = vmatpush.bf16.msrb.mxu1 %v424_v61 }
 0x13f   : > { %v493_v44 = vpop.permute.xlu0 %492  ;;  %1518 = vmatmul.msk.bf16.vlgmr.msra.gmra.mxu2 %vm361_vm7, %v1515_v56 }
 0x140   : > { %v499_v1 = vsel %vm498_vm9, %v491_v49, %v493_v44 }
 0x141   : > { %v506_v2 = vsel %vm365_vm6, %v499_v1, 0  ;;  %v495_v3 = vpop.permute.xlu1 %494  ;;  %v764_v17 = vpop.permute.xlu2 %763 }
 0x142   : > { %521 = vmatpush.bf16.msrb.mxu2 %v506_v2  ;;  %v501_v4 = vsel %vm498_vm9, %v495_v3, %v497_v51  ;;  %v500_v5 = vsel %vm498_vm9, %v493_v44, %v495_v3  ;;  %vm1237_vm9 = vcmask 1048448  }
 0x143   : > { %v512_v6 = vsel %vm365_vm6, %v501_v4, 0  ;;  %v509_v7 = vsel %vm365_vm6, %v500_v5, 0 }
 0x144   : > { %534 = vmatpush.bf16.msrb.mxu3 %v509_v7  ;;  %547 = vmatpush.bf16.msra.mxu0 %v512_v6 }
 0x147   : > { %v582_v10 = vpop.permute.xlu0 %581  ;;  %1520 = vmatmul.msk.bf16.vlgmr.msrb.gmra.mxu0 %vm361_vm7, %v307_v47  ;;  %1524 = vmatmul.msk.bf16.vlgmr.msrb.gmra.mxu3 %vm361_vm7, %v1522_v8 }
 0x149   : > { %v584_v11 = vpop.permute.xlu1 %583  ;;  %v770_v27 = vpop.permute.xlu2 %769 }
 0x14a   : > { %v590_v12 = vsel %vm589_vm10, %v582_v10, %v584_v11  ;;  %v591_v13 = vsel %vm589_vm10, %v584_v11, %v586_v63  ;;  %v435_v10 = vpop.f32.mrf.mxu3 }
 0x14b   : > { %v597_v14 = vsel %vm365_vm6, %v590_v12, 0  ;;  %v600_v15 = vsel %vm365_vm6, %v591_v13, 0 }
 0x14c   : > { %625 = vmatpush.bf16.msra.mxu2 %v600_v15  ;;  %612 = vmatpush.bf16.msra.mxu1 %v597_v14 }
 0x14d   : > { %1521 = vmatmul.msk.bf16.vlgmr.msrb.gmra.mxu1 %vm361_vm7, %v307_v47 }
 0x14f   : > { %v588_v16 = vpop.permute.xlu0 %587  ;;  %1523 = vmatmul.msk.bf16.vlgmr.msrb.gmra.mxu2 %vm361_vm7, %v1522_v8 }
 0x150   : > { %v592_v18 = vsel %vm589_vm10, %v586_v63, %v588_v16  ;;  %vm1243_vm10 = vcmask 15360  }
 0x151   : > { %v603_v19 = vsel %vm365_vm6, %v592_v18, 0  ;;  %v673_v20 = vpop.permute.xlu1 %672  ;;  %v859_v37 = vpop.permute.xlu2 %858 }
 0x152   : > { %638 = vmatpush.bf16.msra.mxu3 %v603_v19  ;;  %v681_v21 = vsel %vm680_vm11, %v673_v20, %v675_v9  ;;  %v437_v11 = vpop.f32.mrf.mxu3 }
 0x153   : > { %v688_v22 = vsel %vm365_vm6, %v681_v21, 0 }
 0x154   : > { %703 = vmatpush.bf16.msrb.mxu0 %v688_v22 }
 0x157   : > { %v677_v24 = vpop.permute.xlu0 %676  ;;  %1525 = vmatmul.msk.bf16.vlgmr.msra.gmra.mxu0 %vm361_vm7, %v1522_v8  ;;  %1529 = vmatmul.msk.bf16.vlgmr.msra.gmra.mxu3 %vm361_vm7, %v1526_v23  ;;  %v1542_v8 = vld [vmem:[%s2012_s1 + $0x1c] sm:$0xf] }
 0x158   : > { %v682_v25 = vsel %vm680_vm11, %v675_v9, %v677_v24  ;;  %v1546_v9 = vld [vmem:[%s2012_s1 + $0x20] sm:$0xf] }
 0x159   : > { %v691_v26 = vsel %vm365_vm6, %v682_v25, 0  ;;  %v679_v28 = vpop.permute.xlu1 %678  ;;  %v948_v50 = vpop.permute.xlu2 %947 }
 0x15a   : > { %716 = vmatpush.bf16.msrb.mxu1 %v691_v26  ;;  %v683_v29 = vsel %vm680_vm11, %v677_v24, %v679_v28  ;;  %vm1372_vm11 = vcmask 818176  }
 0x15b   : > { %v694_v30 = vsel %vm365_vm6, %v683_v29, 0 }
 0x15c   : > { %729 = vmatpush.bf16.msrb.mxu2 %v694_v30 }
 0x15d   : > { %1527 = vmatmul.msk.bf16.vlgmr.msra.gmra.mxu1 %vm361_vm7, %v1526_v23 }
 0x15f   : > { %v766_v31 = vpop.permute.xlu0 %765  ;;  %1528 = vmatmul.msk.bf16.vlgmr.msra.gmra.mxu2 %vm361_vm7, %v1526_v23 }
 0x160   : > { %v772_v32 = vsel %vm771_vm12, %v764_v17, %v766_v31 }
 0x161   : > { %v779_v33 = vsel %vm365_vm6, %v772_v32, 0  ;;  %v768_v34 = vpop.permute.xlu1 %767  ;;  %v1037_v40 = vpop.permute.xlu2 %1036 }
 0x162   : > { %794 = vmatpush.bf16.msrb.mxu3 %v779_v33  ;;  %v773_v35 = vsel %vm771_vm12, %v766_v31, %v768_v34  ;;  %v774_v36 = vsel %vm771_vm12, %v768_v34, %v770_v27  ;;  %vm1416_vm12 = vcmask 7168  }
 0x163   : > { %v782_v38 = vsel %vm365_vm6, %v773_v35, 0  ;;  %v785_v39 = vsel %vm365_vm6, %v774_v36, 0 }
 0x164   : > { %807 = vmatpush.bf16.msra.mxu0 %v782_v38  ;;  %820 = vmatpush.bf16.msra.mxu1 %v785_v39 }
 0x167   : > { %v855_v43 = vpop.permute.xlu0 %854  ;;  %1531 = vmatmul.msk.bf16.vlgmr.msrb.gmra.mxu0 %vm361_vm7, %v1530_v41  ;;  %1535 = vmatmul.msk.bf16.vlgmr.msrb.gmra.mxu3 %vm361_vm7, %v1534_v42 }
 0x169   : > { %v857_v45 = vpop.permute.xlu1 %856  ;;  %v1043_v2 = vpop.permute.xlu2 %1042 }
 0x16a   : > { %v863_v46 = vsel %vm862_vm13, %v855_v43, %v857_v45  ;;  %v864_v47 = vsel %vm862_vm13, %v857_v45, %v859_v37 }
 0x16b   : > { %v870_v48 = vsel %vm365_vm6, %v863_v46, 0  ;;  %v873_v49 = vsel %vm365_vm6, %v864_v47, 0 }
 0x16c   : > { %885 = vmatpush.bf16.msra.mxu2 %v870_v48  ;;  %898 = vmatpush.bf16.msra.mxu3 %v873_v49 }
 0x16d   : > { %1532 = vmatmul.msk.bf16.vlgmr.msrb.gmra.mxu1 %vm361_vm7, %v1530_v41 }
 0x16f   : > { %v861_v51 = vpop.permute.xlu0 %860  ;;  %1533 = vmatmul.msk.bf16.vlgmr.msrb.gmra.mxu2 %vm361_vm7, %v1530_v41 }
 0x170   : > { %v865_v52 = vsel %vm862_vm13, %v859_v37, %v861_v51 }
 0x171   : > { %v876_v53 = vsel %vm365_vm6, %v865_v52, 0  ;;  %v946_v54 = vpop.permute.xlu1 %945 }
 0x172   : > { %911 = vmatpush.bf16.msrb.mxu0 %v876_v53  ;;  %v954_v55 = vsel %vm953_vm14, %v946_v54, %v948_v50 }
 0x173   : > { %v961_v56 = vsel %vm365_vm6, %v954_v55, 0 }
 0x174   : > { %976 = vmatpush.bf16.msrb.mxu1 %v961_v56 }
 0x177   : > { %v950_v58 = vpop.permute.xlu0 %949  ;;  %1536 = vmatmul.msk.bf16.vlgmr.msra.gmra.mxu0 %vm361_vm7, %v1534_v42  ;;  %1540 = vmatmul.msk.bf16.vlgmr.msra.gmra.mxu3 %vm361_vm7, %v1538_v57 }
 0x178   : > { %v955_v59 = vsel %vm953_vm14, %v948_v50, %v950_v58 }
 0x179   : > { %v964_v60 = vsel %vm365_vm6, %v955_v59, 0  ;;  %v952_v61 = vpop.permute.xlu1 %951 }
 0x17a   : > { %989 = vmatpush.bf16.msrb.mxu2 %v964_v60  ;;  %v956_v62 = vsel %vm953_vm14, %v950_v58, %v952_v61 }
 0x17b   : > { %v967_v63 = vsel %vm365_vm6, %v956_v62, 0 }
 0x17c   : > { %1002 = vmatpush.bf16.msrb.mxu3 %v967_v63 }
 0x17d   : > { %1537 = vmatmul.msk.bf16.vlgmr.msra.gmra.mxu1 %vm361_vm7, %v1534_v42 }
 0x17f   : > { %v1039_v0 = vpop.permute.xlu0 %1038  ;;  %1539 = vmatmul.msk.bf16.vlgmr.msra.gmra.mxu2 %vm361_vm7, %v1538_v57 }
 0x180   : > { %v1045_v44 = vsel %vm1044_vm15, %v1037_v40, %v1039_v0 }
 0x181   : > { %v1052_v1 = vsel %vm365_vm6, %v1045_v44, 0  ;;  %v1041_v3 = vpop.permute.xlu1 %1040 }
 0x182   : > { %1067 = vmatpush.bf16.msra.mxu0 %v1052_v1  ;;  %v1046_v4 = vsel %vm1044_vm15, %v1039_v0, %v1041_v3  ;;  %v1047_v5 = vsel %vm1044_vm15, %v1041_v3, %v1043_v2 }
 0x183   : > { %v1055_v6 = vsel %vm365_vm6, %v1046_v4, 0  ;;  %v1058_v7 = vsel %vm365_vm6, %v1047_v5, 0  ;;  %vm1213_vm6 = vcmask 917248  }
 0x184   : > { %1080 = vmatpush.bf16.msra.mxu1 %v1055_v6  ;;  %1093 = vmatpush.bf16.msra.mxu2 %v1058_v7 }
 0x187   : > { %1541 = vmatmul.msk.bf16.vlgmr.msrb.gmra.mxu0 %vm361_vm7, %v1538_v57  ;;  %1545 = vmatmul.msk.bf16.vlgmr.msrb.gmra.mxu3 %vm361_vm7, %v1542_v8 }
 0x18d   : > { %1543 = vmatmul.msk.bf16.vlgmr.msrb.gmra.mxu1 %vm361_vm7, %v1542_v8 }
 0x18f   : > { %1544 = vmatmul.msk.bf16.vlgmr.msrb.gmra.mxu2 %vm361_vm7, %v1542_v8 }
 0x197   : > { %1547 = vmatmul.msk.bf16.vlgmr.msra.gmra.mxu0 %vm361_vm7, %v1546_v9 }
 0x19d   : > { %1548 = vmatmul.msk.bf16.vlgmr.msra.gmra.mxu1 %vm361_vm7, %v1546_v9 }
 0x19f   : > { %1549 = vmatmul.msk.bf16.vlgmr.msra.gmra.mxu2 %vm361_vm7, %v1546_v9 }
 0x1b4   : > { %v384_v12 = vpop.f32.mrf.mxu0 }
 0x1b5   : > { %v436_v13 = vadd.f32 %v435_v10, %v384_v12 }
 0x1ba   : > { %v397_v14 = vpop.f32.mrf.mxu1 }
 0x1bc   : > { %v386_v15 = vpop.f32.mrf.mxu0 }
 0x1c2   : > { %v399_v16 = vpop.f32.mrf.mxu1  ;;  %v410_v17 = vpop.f32.mrf.mxu2 }
 0x1c4   : > { %v448_v18 = vpop.f32.mrf.mxu0 }
 0x1c5   : > { %v449_v19 = vadd.f32 %v448_v18, %v397_v14 }
 0x1ca   : > { %v461_v20 = vpop.f32.mrf.mxu1  ;;  %v412_v22 = vpop.f32.mrf.mxu2 }
 0x1cb   : > { %v462_v21 = vadd.f32 %v461_v20, %v410_v17  ;;  %v536_v23 = vpop.f32.mrf.mxu3 }
 0x1cc   : > { %v554_v24 = vadd.f32 %v536_v23, %v449_v19  ;;  %v450_v25 = vpop.f32.mrf.mxu0 }
 0x1d2   : > { %v463_v26 = vpop.f32.mrf.mxu1  ;;  %v523_v27 = vpop.f32.mrf.mxu2 }
 0x1d3   : > { %v538_v28 = vpop.f32.mrf.mxu3  ;;  %v553_v0 = vadd.f32 %v523_v27, %v436_v13 }
 0x1d4   : > { %v549_v29 = vpop.f32.mrf.mxu0 }
 0x1d5   : > { %v555_v30 = vadd.f32 %v549_v29, %v462_v21 }
 0x1da   : > { %v614_v31 = vpop.f32.mrf.mxu1  ;;  %v525_v32 = vpop.f32.mrf.mxu2 }
 0x1db   : > { %v640_v33 = vpop.f32.mrf.mxu3  ;;  %v644_v3 = vadd.f32 %v614_v31, %v553_v0 }
 0x1dc   : > { %v646_v34 = vadd.f32 %v640_v33, %v555_v30  ;;  %v551_v35 = vpop.f32.mrf.mxu0 }
 0x1e2   : > { %v616_v36 = vpop.f32.mrf.mxu1  ;;  %v627_v37 = vpop.f32.mrf.mxu2 }
 0x1e3   : > { %v642_v38 = vpop.f32.mrf.mxu3  ;;  %v645_v39 = vadd.f32 %v627_v37, %v554_v24 }
 0x1e4   : > { %v705_v41 = vpop.f32.mrf.mxu0 }
 0x1e5   : > { %v735_v6 = vadd.f32 %v705_v41, %v644_v3 }
 0x1ea   : > { %v718_v42 = vpop.f32.mrf.mxu1  ;;  %v629_v45 = vpop.f32.mrf.mxu2 }
 0x1eb   : > { %v736_v43 = vadd.f32 %v718_v42, %v645_v39  ;;  %v796_v46 = vpop.f32.mrf.mxu3 }
 0x1ec   : > { %v707_v47 = vpop.f32.mrf.mxu0  ;;  %v826_v7 = vadd.f32 %v796_v46, %v735_v6 }
 0x1f2   : > { %v720_v48 = vpop.f32.mrf.mxu1  ;;  %v731_v49 = vpop.f32.mrf.mxu2 }
 0x1f3   : > { %v798_v50 = vpop.f32.mrf.mxu3  ;;  %v737_v51 = vadd.f32 %v731_v49, %v646_v34 }
 0x1f4   : > { %v809_v52 = vpop.f32.mrf.mxu0 }
 0x1f5   : > { %v827_v53 = vadd.f32 %v809_v52, %v736_v43 }
 0x1fa   : > { %v822_v54 = vpop.f32.mrf.mxu1  ;;  %v733_v56 = vpop.f32.mrf.mxu2 }
 0x1fb   : > { %v828_v55 = vadd.f32 %v822_v54, %v737_v51  ;;  %v900_v57 = vpop.f32.mrf.mxu3 }
 0x1fc   : > { %v918_v58 = vadd.f32 %v900_v57, %v827_v53  ;;  %v811_v40 = vpop.f32.mrf.mxu0 }
 0x202   : > { %v824_v59 = vpop.f32.mrf.mxu1  ;;  %v887_v60 = vpop.f32.mrf.mxu2 }
 0x203   : > { %v902_v61 = vpop.f32.mrf.mxu3  ;;  %v917_v8 = vadd.f32 %v887_v60, %v826_v7 }
 0x204   : > { %v913_v62 = vpop.f32.mrf.mxu0 }
 0x205   : > { %v919_v63 = vadd.f32 %v913_v62, %v828_v55 }
 0x20a   : > { %v978_v44 = vpop.f32.mrf.mxu1  ;;  %v889_v1 = vpop.f32.mrf.mxu2 }
 0x20b   : > { %v1004_v2 = vpop.f32.mrf.mxu3  ;;  %v1008_v12 = vadd.f32 %v978_v44, %v917_v8 }
 0x20c   : > { %v1010_v4 = vadd.f32 %v1004_v2, %v919_v63  ;;  %v915_v5 = vpop.f32.mrf.mxu0 }
 0x212   : > { %v980_v9 = vpop.f32.mrf.mxu1  ;;  %v991_v10 = vpop.f32.mrf.mxu2 }
 0x213   : > { %v1006_v11 = vpop.f32.mrf.mxu3  ;;  %v1009_v23 = vadd.f32 %v991_v10, %v918_v58 }
 0x214   : > { %v1069_v14 = vpop.f32.mrf.mxu0 }
 0x215   : > { %v1099_v13 = vadd.f32 %v1069_v14, %v1008_v12 }
 0x217   : > { %1172 = vrot.lane.b32.xlu0 %v1099_v13, %s1643_s20  ;;  %1134 = vrot.lane.b32.xlu1 %v1099_v13, %s1644_s21  ;;  %1103 = vst.msk [vmem:[%s1859_s19] sm:$0xff] %vm1102_vm0, %v1099_v13  ;;  %v1108_v22 = vmul.f32 %v1099_v13, %v1099_v13  ;;  %v1104_v25 = vsel %vm1102_vm0, %v1099_v13, 0.0 }
 0x218   : > { %1114 = vrot.lane.b32.xlu2 %v1099_v13, %s1636_s8  ;;  %s1649_s8 = smov 2  }
 0x219   : > { %v1109_v39 = vsel %vm1102_vm0, %v1108_v22, 0.0 }
 0x21a   : > { %v1082_v15 = vpop.f32.mrf.mxu1  ;;  %v993_v16 = vpop.f32.mrf.mxu2 }
 0x21b   : > { %v1874_v24 = vadd.f32 %v1082_v15, %v1009_v23 }
 0x21c   : > { %v1071_v17 = vpop.f32.mrf.mxu0 }
 0x21d   : > { %v1893_v26 = vmul.f32 %v1874_v24, %v1874_v24 }
 0x21f   : > { %1196 = vrot.lane.b32.xlu0 %v1099_v13, %s1645_s22  ;;  %1153 = vrot.lane.b32.xlu1 %v1099_v13, %s1646_s23 }
 0x220   : > { %1119 = vrot.lane.b32.xlu2 %v1099_v13, %s1637_s9 }
 0x222   : > { %v1084_v18 = vpop.f32.mrf.mxu1  ;;  %v1095_v19 = vpop.f32.mrf.mxu2 }
 0x223   : > { %v1866_v20 = vadd.f32 %v1095_v19, %v1010_v4 }
 0x227   : > { %1210 = vrot.lane.b32.xlu0 %v1099_v13, %s1647_s24  ;;  %1158 = vrot.lane.b32.xlu1 %v1099_v13, %s1648_s25 }
 0x228   : > { %1139 = vrot.lane.b32.xlu2 %v1099_v13, %s1640_s15 }
 0x22a   : > { %v1097_v21 = vpop.f32.mrf.mxu2 }
 0x22f   : > { %1239 = vrot.lane.b32.xlu0 %v1099_v13, %s1649_s8  ;;  %1191 = vrot.lane.b32.xlu1 %v1099_v13, %s1650_s26 }
 0x230   : > { %1177 = vrot.lane.b32.xlu2 %v1099_v13, %s1651_s27 }
 0x237   : > { %1230 = vrot.lane.b32.xlu1 %v1099_v13, %s1652_s28 }
 0x238   : > { %1215 = vrot.lane.b32.xlu2 %v1099_v13, %s1653_s29 }
 0x23f   : > { %1146 = vrot.lane.b32.xlu1 %v1108_v22, %s1640_s15  ;;  %s1656_s15 = smov 40  }
 0x240   : > { %1252 = vrot.lane.b32.xlu2 %v1108_v22, %s1649_s8 }
 0x247   : > { %1184 = vrot.lane.b32.xlu1 %v1108_v22, %s1651_s27 }
 0x248   : > { %1262 = vrot.lane.b32.xlu2 %v1874_v24, %s1654_s30 }
 0x24f   : > { %1222 = vrot.lane.b32.xlu1 %v1108_v22, %s1653_s29 }
 0x250   : > { %1295 = vrot.lane.b32.xlu2 %v1874_v24, %s1639_s11  ;;  %s1658_s11 = smov 102  }
 0x257   : > { %1232 = vrot.lane.b32.xlu1 %v1874_v24, %s1652_s28 }
 0x258   : > { %1299 = vrot.lane.b32.xlu2 %v1874_v24, %s1655_s4 }
 0x259   : > { %1105 = vadd.xlane.f32.xlu0 %v1104_v25 }
 0x25f   : > { %1241 = vrot.lane.b32.xlu1 %v1874_v24, %s1649_s8 }
 0x260   : > { %1335 = vrot.lane.b32.xlu2 %v1874_v24, %s1656_s15 }
 0x267   : > { %1281 = vrot.lane.b32.xlu1 %v1874_v24, %s1657_s5 }
 0x268   : > { %1349 = vrot.lane.b32.xlu2 %v1874_v24, %s1658_s11 }
 0x26d   : > { %1127 = vrot.lane.b32.xlu0 %v1108_v22, %s1637_s9 }
 0x26f   : > { %1317 = vrot.lane.b32.xlu1 %v1874_v24, %s1659_s6 }
 0x270   : > { %1288 = vrot.lane.b32.xlu2 %v1893_v26, %s1657_s5 }
 0x272   : > { %v1115_v27 = vpop.permute.xlu2 %1114 }
 0x273   : > { %1118 = vst.msk [vmem:[%s1859_s19] sm:$0xff] %vm1117_vm1, %v1115_v27 }
 0x275   : > { %1165 = vrot.lane.b32.xlu0 %v1108_v22, %s1648_s25 }
 0x277   : > { %1353 = vrot.lane.b32.xlu1 %v1874_v24, %s1660_s7 }
 0x278   : > { %1342 = vrot.lane.b32.xlu2 %v1893_v26, %s1656_s15 }
 0x27a   : > { %v1120_v28 = vpop.permute.xlu2 %1119 }
 0x27b   : > { %v1122_v38 = vsel %vm1102_vm0, %v1120_v28, 0.0 }
 0x27d   : > { %1203 = vrot.lane.b32.xlu0 %v1108_v22, %s1645_s22  ;;  %s181_s22 = scalar_lea.vmem %s2014_s3, %s1552_s14 }
 0x282   : > { %v1140_v29 = vpop.permute.xlu2 %1139 }
 0x283   : > { %v1142_v52 = vsel %vm1102_vm0, %v1140_v29, 0.0 }
 0x285   : > { %1277 = vrot.lane.b32.xlu0 %v1874_v24, %s1637_s9  ;;  %s1663_s9 = smov 4  }
 0x289   : > { %v1135_v30 = vpop.permute.xlu1 %1134  ;;  %v1173_v32 = vpop.permute.xlu0 %1172 }
 0x28a   : > { %1138 = vst.msk [vmem:[%s1859_s19] sm:$0xff] %vm1137_vm2, %v1135_v30  ;;  %v1178_v31 = vpop.permute.xlu2 %1177 }
 0x28b   : > { %v1180_v55 = vsel %vm1102_vm0, %v1178_v31, 0.0 }
 0x28d   : > { %1313 = vrot.lane.b32.xlu0 %v1874_v24, %s1661_s10 }
 0x291   : > { %v1154_v33 = vpop.permute.xlu1 %1153  ;;  %v1197_v35 = vpop.permute.xlu0 %1196 }
 0x292   : > { %1157 = vst.msk [vmem:[%s1859_s19] sm:$0xff] %vm1156_vm3, %v1154_v33  ;;  %v1216_v34 = vpop.permute.xlu2 %1215  ;;  %v1199_v1 = vsel %vm1102_vm0, %v1197_v35, 0.0 }
 0x293   : > { %1176 = vst.msk [vmem:[%s1859_s19] sm:$0xff] %vm1175_vm4, %v1173_v32  ;;  %v1218_v58 = vsel %vm1102_vm0, %v1216_v34, 0.0 }
 0x295   : > { %1331 = vrot.lane.b32.xlu0 %v1874_v24, %s1662_s16 }
 0x299   : > { %v1159_v36 = vpop.permute.xlu1 %1158  ;;  %v1211_v42 = vpop.permute.xlu0 %1210 }
 0x29a   : > { %v1915_v37 = vpop.permute.xlu2 %1252  ;;  %v1161_v63 = vsel %vm1102_vm0, %v1159_v36, 0.0 }
 0x29d   : > { %1254 = vrot.lane.b32.xlu0 %v1893_v26, %s1649_s8 }
 0x2a1   : > { %1123 = vadd.xlane.f32.xlu2 %v1122_v38  ;;  %v1192_v41 = vpop.permute.xlu1 %1191  ;;  %1110 = vadd.xlane.f32.xlu1 %v1109_v39  ;;  %v1240_v53 = vpop.permute.xlu0 %1239  ;;  %v1386_v38 = vmul.f32 %v1866_v20, %v1866_v20 }
 0x2a2   : > { %1195 = vst.msk [vmem:[%s1859_s19] sm:$0xff] %vm1194_vm5, %v1192_v41  ;;  %v1263_v43 = vpop.permute.xlu2 %1262 }
 0x2a3   : > { %1214 = vst.msk [vmem:[%s1859_s19] sm:$0xff] %vm1213_vm6, %v1211_v42  ;;  %v1266_v13 = vsel %vm1102_vm0, %v1263_v43, 0.0 }
 0x2a4   : > { %1265 = vst.msk [vmem:[%s1859_s19 + $0x8] sm:$0xff] %vm1102_vm0, %v1263_v43 }
 0x2a5   : > { %1324 = vrot.lane.b32.xlu0 %v1893_v26, %s1659_s6 }
 0x2a9   : > { %v1231_v45 = vpop.permute.xlu1 %1230 }
 0x2aa   : > { %v1296_v54 = vpop.permute.xlu2 %1295 }
 0x2b1   : > { %v1147_v46 = vpop.permute.xlu1 %1146 }
 0x2b2   : > { %v1149_v47 = vsel %vm1102_vm0, %v1147_v46, 0.0  ;;  %v1300_v57 = vpop.permute.xlu2 %1299 }
 0x2b3   : > { %1150 = vadd.xlane.f32.xlu2 %v1149_v47  ;;  %v1302_v18 = vsel %vm1102_vm0, %v1300_v57, 0.0 }
 0x2b9   : > { %v1185_v48 = vpop.permute.xlu1 %1184 }
 0x2ba   : > { %1270 = vrot.lane.b32.xlu1 %v1893_v26, %s1654_s30  ;;  %v1336_v59 = vpop.permute.xlu2 %1335  ;;  %v1187_v44 = vsel %vm1102_vm0, %v1185_v48, 0.0 }
 0x2bb   : > { %v1338_v60 = vsel %vm1102_vm0, %v1336_v59, 0.0 }
 0x2c1   : > { %v1223_v49 = vpop.permute.xlu1 %1222 }
 0x2c2   : > { %1306 = vrot.lane.b32.xlu1 %v1893_v26, %s1655_s4  ;;  %v1350_v4 = vpop.permute.xlu2 %1349  ;;  %v1225_v9 = vsel %vm1102_vm0, %v1223_v49, 0.0 }
 0x2c9   : > { %v1233_v50 = vpop.permute.xlu1 %1232 }
 0x2ca   : > { %v1235_v51 = vsel %vm1234_vm8, %v1231_v45, %v1233_v50  ;;  %v1289_v10 = vpop.permute.xlu2 %1288 }
 0x2cb   : > { %1238 = vst.msk [vmem:[%s1859_s19] sm:$0xff] %vm1237_vm9, %v1235_v51  ;;  %v1291_v34 = vsel %vm1102_vm0, %v1289_v10, 0.0 }
 0x2cc   : > { %v1106_v56 = vpop.xlane.xlu0 %1105 }
 0x2cf   : > { %1143 = vadd.xlane.f32.xlu0 %v1142_v52 }
 0x2d1   : > { %v1242_v2 = vpop.permute.xlu1 %1241 }
 0x2d2   : > { %v1343_v16 = vpop.permute.xlu2 %1342  ;;  %v1244_v19 = vsel %vm1243_vm10, %v1240_v53, %v1242_v2 }
 0x2d3   : > { %v1246_v21 = vsel %vm1102_vm0, %v1244_v19, 0.0  ;;  %v1345_v28 = vsel %vm1102_vm0, %v1343_v16, 0.0 }
 0x2d7   : > { %1181 = vadd.xlane.f32.xlu0 %v1180_v55 }
 0x2d9   : > { %v1282_v7 = vpop.permute.xlu1 %1281 }
 0x2da   : > { %v1284_v11 = vsel %vm1102_vm0, %v1282_v7, 0.0 }
 0x2df   : > { %v1128_v40 = vpop.permute.xlu0 %1127  ;;  %1219 = vadd.xlane.f32.xlu0 %v1218_v58 }
 0x2e0   : > { %v1130_v6 = vsel %vm1102_vm0, %v1128_v40, 0.0 }
 0x2e1   : > { %v1318_v14 = vpop.permute.xlu1 %1317 }
 0x2e2   : > { %v1320_v15 = vsel %vm1102_vm0, %v1318_v14, 0.0 }
 0x2e7   : > { %v1166_v61 = vpop.permute.xlu0 %1165  ;;  %1339 = vadd.xlane.f32.xlu0 %v1338_v60 }
 0x2e8   : > { %v1168_v62 = vsel %vm1102_vm0, %v1166_v61, 0.0 }
 0x2e9   : > { %1169 = vadd.xlane.f32.xlu2 %v1168_v62  ;;  %v1354_v29 = vpop.permute.xlu1 %1353 }
 0x2ea   : > { %v1356_v30 = vsel %vm1102_vm0, %v1354_v29, 0.0 }
 0x2ec   : > { %1162 = vadd.xlane.f32.xlu1 %v1161_v63 }
 0x2ef   : > { %v1204_v0 = vpop.permute.xlu0 %1203 }
 0x2f0   : > { %v1206_v5 = vsel %vm1102_vm0, %v1204_v0, 0.0 }
 0x2f1   : > { %1188 = vadd.xlane.f32.xlu2 %v1187_v44 }
 0x2f4   : > { %1200 = vadd.xlane.f32.xlu1 %v1199_v1 }
 0x2f7   : > { %v1278_v3 = vpop.permute.xlu0 %1277 }
 0x2f8   : > { %1280 = vst.msk [vmem:[%s1859_s19 + $0x8] sm:$0xff] %vm1117_vm1, %v1278_v3 }
 0x2f9   : > { %1298 = vst.msk [vmem:[%s1859_s19 + $0x8] sm:$0xff] %vm1137_vm2, %v1296_v54  ;;  %1207 = vadd.xlane.f32.xlu2 %v1206_v5 }
 0x2fc   : > { %1131 = vadd.xlane.f32.xlu1 %v1130_v6 }
 0x2ff   : > { %v1314_v8 = vpop.permute.xlu0 %1313 }
 0x300   : > { %1316 = vst.msk [vmem:[%s1859_s19 + $0x8] sm:$0xff] %vm1156_vm3, %v1314_v8 }
 0x301   : > { %1226 = vadd.xlane.f32.xlu2 %v1225_v9 }
 0x304   : > { %1285 = vadd.xlane.f32.xlu1 %v1284_v11 }
 0x307   : > { %v1332_v12 = vpop.permute.xlu0 %1331 }
 0x308   : > { %1334 = vst.msk [vmem:[%s1859_s19 + $0x8] sm:$0xff] %vm1175_vm4, %v1332_v12 }
 0x309   : > { %1352 = vst.msk [vmem:[%s1859_s19 + $0x8] sm:$0xff] %vm1194_vm5, %v1350_v4  ;;  %1267 = vadd.xlane.f32.xlu2 %v1266_v13 }
 0x30c   : > { %1321 = vadd.xlane.f32.xlu1 %v1320_v15 }
 0x30f   : > { %v1255_v17 = vpop.permute.xlu0 %1254 }
 0x310   : > { %v1256_v0 = vsel %vm1243_vm10, %v1915_v37, %v1255_v17 }
 0x311   : > { %1303 = vadd.xlane.f32.xlu2 %v1302_v18  ;;  %v1258_v44 = vsel %vm1102_vm0, %v1256_v0, 0.0 }
 0x314   : > { %v1124_v22 = vpop.xlane.xlu2 %1123  ;;  %1247 = vadd.xlane.f32.xlu1 %v1246_v21  ;;  %v1111_v31 = vpop.xlane.xlu1 %1110 }
 0x315   : > { %v1125_v23 = vadd.f32 %v1124_v22, %v1106_v56 }
 0x317   : > { %v1325_v25 = vpop.permute.xlu0 %1324 }
 0x318   : > { %v1327_v27 = vsel %vm1102_vm0, %v1325_v25, 0.0 }
 0x319   : > { %1328 = vadd.xlane.f32.xlu2 %v1327_v27 }
 0x31c   : > { %1346 = vadd.xlane.f32.xlu1 %v1345_v28 }
 0x321   : > { %1357 = vadd.xlane.f32.xlu2 %v1356_v30 }
 0x326   : > { %v1151_v42 = vpop.xlane.xlu2 %1150 }
 0x32c   : > { %v1271_v32 = vpop.permute.xlu1 %1270 }
 0x32d   : > { %v1273_v33 = vsel %vm1102_vm0, %v1271_v32, 0.0 }
 0x32e   : > { %1274 = vadd.xlane.f32.xlu0 %v1273_v33 }
 0x334   : > { %v1307_v35 = vpop.permute.xlu1 %1306 }
 0x335   : > { %v1309_v36 = vsel %vm1102_vm0, %v1307_v35, 0.0 }
 0x336   : > { %1292 = vadd.xlane.f32.xlu0 %v1291_v34 }
 0x339   : > { %1376 = vrot.lane.b32.xlu2 %v1874_v24, %s1663_s9 }
 0x33e   : > { %1310 = vadd.xlane.f32.xlu0 %v1309_v36 }
 0x341   : > { %1409 = vrot.lane.b32.xlu2 %v1386_v38, %s1652_s28 }
 0x342   : > { %v1144_v39 = vpop.xlane.xlu0 %1143 }
 0x343   : > { %v1145_v41 = vadd.f32 %v1144_v39, %v1125_v23 }
 0x34a   : > { %v1182_v45 = vpop.xlane.xlu0 %1181 }
 0x352   : > { %1360 = vrot.lane.b32.xlu0 %v1893_v26, %s1660_s7  ;;  %v1220_v52 = vpop.xlane.xlu0 %1219 }
 0x35a   : > { %1368 = vrot.lane.b32.xlu0 %v1874_v24, %s1664_s17  ;;  %v1340_v9 = vpop.xlane.xlu0 %1339 }
 0x35c   : > { %v1170_v43 = vpop.xlane.xlu2 %1169 }
 0x35f   : > { %v1163_v46 = vpop.xlane.xlu1 %1162 }
 0x360   : > { %v1164_v47 = vadd.f32 %v1163_v46, %v1145_v41 }
 0x362   : > { %v1183_v48 = vadd.f32 %v1182_v45, %v1164_v47 }
 0x364   : > { %v1189_v49 = vpop.xlane.xlu2 %1188 }
 0x367   : > { %v1201_v50 = vpop.xlane.xlu1 %1200 }
 0x368   : > { %v1202_v51 = vadd.f32 %v1201_v50, %v1183_v48 }
 0x36a   : > { %v1221_v53 = vadd.f32 %v1220_v52, %v1202_v51 }
 0x36c   : > { %v1208_v54 = vpop.xlane.xlu2 %1207 }
 0x36f   : > { %v1132_v55 = vpop.xlane.xlu1 %1131 }
 0x370   : > { %v1133_v56 = vadd.f32 %v1132_v55, %v1111_v31 }
 0x372   : > { %v1152_v57 = vadd.f32 %v1151_v42, %v1133_v56 }
 0x374   : > { %v1171_v58 = vadd.f32 %v1170_v43, %v1152_v57  ;;  %v1227_v40 = vpop.xlane.xlu2 %1226 }
 0x376   : > { %v1190_v59 = vadd.f32 %v1189_v49, %v1171_v58 }
 0x377   : > { %v1286_v60 = vpop.xlane.xlu1 %1285 }
 0x378   : > { %v1209_v61 = vadd.f32 %v1208_v54, %v1190_v59 }
 0x37a   : > { %v1228_v24 = vadd.f32 %v1227_v40, %v1209_v61 }
 0x37c   : > { %v1268_v62 = vpop.xlane.xlu2 %1267 }
 0x37f   : > { %v1322_v63 = vpop.xlane.xlu1 %1321 }
 0x384   : > { %v1304_v1 = vpop.xlane.xlu2 %1303  ;;  %1259 = vadd.xlane.f32.xlu0 %v1258_v44 }
 0x387   : > { %v1248_v2 = vpop.xlane.xlu1 %1247 }
 0x388   : > { %v1249_v3 = vadd.f32 %v1248_v2, %v1221_v53 }
 0x38a   : > { %v1269_v4 = vadd.f32 %v1268_v62, %v1249_v3 }
 0x38c   : > { %v1287_v5 = vadd.f32 %v1286_v60, %v1269_v4  ;;  %v1329_v6 = vpop.xlane.xlu2 %1328 }
 0x38e   : > { %v1305_v7 = vadd.f32 %v1304_v1, %v1287_v5 }
 0x38f   : > { %v1347_v25 = vpop.xlane.xlu1 %1346 }
 0x390   : > { %v1323_v8 = vadd.f32 %v1322_v63, %v1305_v7 }
 0x392   : > { %v1341_v10 = vadd.f32 %v1340_v9, %v1323_v8 }
 0x394   : > { %v1358_v11 = vpop.xlane.xlu2 %1357 }
 0x395   : > { %v1359_v12 = vadd.f32 %v1358_v11, %v1341_v10 }
 0x398   : > { %1370 = vrot.lane.b32.xlu0 %v1866_v20, %s1664_s17 }
 0x39c   : > { %v1377_v30 = vpop.permute.xlu2 %1376 }
 0x3a0   : > { %1378 = vrot.lane.b32.xlu0 %v1866_v20, %s1663_s9 }
 0x3a1   : > { %v1275_v37 = vpop.xlane.xlu0 %1274 }
 0x3a4   : > { %v1410_v33 = vpop.permute.xlu2 %1409 }
 0x3a5   : > { %v1412_v35 = vsel %vm1102_vm0, %v1410_v33, 0.0 }
 0x3a8   : > { %1388 = vrot.lane.b32.xlu0 %v1893_v26, %s1663_s9 }
 0x3a9   : > { %v1293_v14 = vpop.xlane.xlu0 %1292 }
 0x3b0   : > { %1390 = vrot.lane.b32.xlu0 %v1386_v38, %s1663_s9 }
 0x3b1   : > { %v1311_v13 = vpop.xlane.xlu0 %1310 }
 0x3c4   : > { %v1361_v15 = vpop.permute.xlu0 %1360 }
 0x3c5   : > { %v1363_v16 = vsel %vm1102_vm0, %v1361_v15, 0.0 }
 0x3c6   : > { %1364 = vadd.xlane.f32.xlu1 %v1363_v16 }
 0x3cc   : > { %v1369_v17 = vpop.permute.xlu0 %1368 }
 0x3df   : > { %1402 = vrot.lane.b32.xlu1 %v1866_v20, %s1652_s28 }
 0x3e7   : > { %1398 = vrot.lane.b32.xlu1 %v1866_v20, %s1665_s18 }
 0x3f7   : > { %v1260_v18 = vpop.xlane.xlu0 %1259 }
 0x3f8   : > { %v1261_v19 = vadd.f32 %v1260_v18, %v1228_v24 }
 0x3fa   : > { %v1276_v21 = vadd.f32 %v1275_v37, %v1261_v19 }
 0x3fc   : > { %v1294_v26 = vadd.f32 %v1293_v14, %v1276_v21 }
 0x3fe   : > { %v1312_v22 = vadd.f32 %v1311_v13, %v1294_v26 }
 0x400   : > { %v1330_v23 = vadd.f32 %v1329_v6, %v1312_v22 }
 0x402   : > { %v1348_v27 = vadd.f32 %v1347_v25, %v1330_v23 }
 0x40a   : > { %v1371_v28 = vpop.permute.xlu0 %1370 }
 0x40b   : > { %v1373_v29 = vsel %vm1372_vm11, %v1369_v17, %v1371_v28 }
 0x40c   : > { %1375 = vst.msk [vmem:[%s1859_s19 + $0x8] sm:$0xff] %vm1213_vm6, %v1373_v29 }
 0x412   : > { %v1379_v31 = vpop.permute.xlu0 %1378 }
 0x413   : > { %v1380_v32 = vsel %vm361_vm7, %v1377_v30, %v1379_v31 }
 0x414   : > { %v1382_v20 = vsel %vm1102_vm0, %v1380_v32, 0.0 }
 0x415   : > { %1383 = vadd.xlane.f32.xlu0 %v1382_v20 }
 0x41a   : > { %v1389_v34 = vpop.permute.xlu0 %1388 }
 0x41d   : > { %1413 = vadd.xlane.f32.xlu0 %v1412_v35 }
 0x422   : > { %v1391_v36 = vpop.permute.xlu0 %1390 }
 0x423   : > { %v1392_v38 = vsel %vm361_vm7, %v1389_v34, %v1391_v36 }
 0x424   : > { %v1394_v39 = vsel %vm1102_vm0, %v1392_v38, 0.0 }
 0x425   : > { %1395 = vadd.xlane.f32.xlu2 %v1394_v39 }
 0x439   : > { %v1365_v41 = vpop.xlane.xlu1 %1364 }
 0x43a   : > { %v1366_v42 = vadd.f32 %v1365_v41, %v1348_v27 }
 0x451   : > { %v1403_v43 = vpop.permute.xlu1 %1402 }
 0x452   : > { %v1405_v45 = vsel %vm1102_vm0, %v1403_v43, 0.0 }
 0x453   : > { %1406 = vadd.xlane.f32.xlu1 %v1405_v45 }
 0x459   : > { %v1399_v46 = vpop.permute.xlu1 %1398 }
 0x45a   : > { %1401 = vst.msk [vmem:[%s1859_s19 + $0x8] sm:$0xff] %vm1237_vm9, %v1399_v46 }
 0x488   : > { %v1384_v47 = vpop.xlane.xlu0 %1383 }
 0x489   : > { %v1385_v50 = vadd.f32 %v1384_v47, %v1359_v12 }
 0x490   : > { %v1414_v51 = vpop.xlane.xlu0 %1413 }
 0x498   : > { %v1396_v48 = vpop.xlane.xlu2 %1395 }
 0x499   : > { %v1397_v49 = vadd.f32 %v1396_v48, %v1366_v42 }
 0x49b   : > { %v1415_v53 = vadd.f32 %v1414_v51, %v1397_v49 }
 0x4c6   : > { %v1407_v52 = vpop.xlane.xlu1 %1406 }
 0x4c7   : > { %v1408_v54 = vadd.f32 %v1407_v52, %v1385_v50 }
 0x4c9   : > { %v1417_v55 = vsel %vm1416_vm12, %v1408_v54, %v1415_v53 }
 0x4ca   : > { %1418 = vst.msk [vmem:[%s181_s22] sm:$0xff] %vm1243_vm10, %v1417_v55 }
 0x4cb PF: > { %s14_s12 = sadd.s32 1, %s1616_s12  }
 0x4cc   : > { %p11_p4 = scmp.ge.s32.totalorder %s14_s12, 4  }
 0x4ce   :  { %13 = sbr.rel (!%p11_p4) target bundleno = 1 (0x1), region = 87 }

</bundles_post_ra>
